<compile_context>
chip_gen: v5e
topology: v5e:2x2
jax: 0.10.0
libtpu: 0.0.40
codegen_flags: <defaults>
</compile_context>

<pallas_src>
import math
from functools import partial

import numpy as np
import jax
import jax.numpy as jnp
from jax import lax
from jax.experimental import pallas as pl
from jax.experimental.pallas import tpu as pltpu


# ----------------------------------------------------------------------------
# Small helpers
# ----------------------------------------------------------------------------

def _round_up(x, m):
    return ((x + m - 1) // m) * m


def _pick_tile(dim, cap, align):
    """Largest block size <= cap that evenly tiles `dim` and is a multiple of
    `align`, falling back to the full (untiled) dimension."""
    if dim <= cap:
        return dim
    t = (cap // align) * align
    while t >= align:
        if dim % t == 0:
            return t
        t -= align
    return dim


_VMEM_LIMIT = None


def _vmem_limit_bytes():
    """Per-generation scoped-VMEM budget: v7x has only 64 MiB physical VMEM,
    v5e/v6e have 128 MiB."""
    global _VMEM_LIMIT
    if _VMEM_LIMIT is None:
        try:
            kind = jax.devices()[0].device_kind.lower()
        except Exception:
            kind = ""
        if "v7" in kind or "7x" in kind:
            _VMEM_LIMIT = 48 * 1024 * 1024
        elif "v6" in kind or "v5" in kind:
            _VMEM_LIMIT = 96 * 1024 * 1024
        else:
            _VMEM_LIMIT = 64 * 1024 * 1024
    return _VMEM_LIMIT


def _erf_exact(x):
    """erf via Abramowitz-Stegun 7.1.26 (|abs err| <= 1.5e-7).  Uses only
    exp/mul/add/where, all of which lower cleanly in Mosaic; accuracy is far
    below bf16 resolution so this matches torch.nn.GELU (exact) semantics."""
    a1, a2, a3, a4, a5 = 0.254829592, -0.284496736, 1.421413741, -1.453152027, 1.061405429
    pconst = 0.3275911
    sgn = jnp.where(x >= 0.0, 1.0, -1.0)
    ax = jnp.abs(x)
    t = 1.0 / (1.0 + pconst * ax)
    poly = ((((a5 * t + a4) * t + a3) * t + a2) * t + a1) * t
    return sgn * (1.0 - poly * jnp.exp(-ax * ax))


# ----------------------------------------------------------------------------
# Fused (LayerNorm?) -> matmul -> (+bias) -> (GELU?) -> (+residual?) kernel
# ----------------------------------------------------------------------------

def _matmul_kernel(*refs, has_ln, has_bias, has_res, act, eps, multi_k):
    idx = 0
    x_ref = refs[idx]; idx += 1
    w_ref = refs[idx]; idx += 1
    if has_ln:
        g_ref = refs[idx]; idx += 1
        be_ref = refs[idx]; idx += 1
    if has_bias:
        b_ref = refs[idx]; idx += 1
    if has_res:
        r_ref = refs[idx]; idx += 1
    o_ref = refs[idx]; idx += 1
    if has_ln:
        xn_ref = refs[idx]; idx += 1       # (tm, K) bf16 cached LN(x)
    if multi_k:
        acc_ref = refs[idx]; idx += 1      # (tm, tn) f32 accumulator

    def epilogue(y):
        if has_bias:
            y = y + b_ref[...].astype(jnp.float32)
        if act == 'gelu':
            y = 0.5 * y * (1.0 + _erf_exact(y * jnp.float32(0.7071067811865476)))
        if has_res:
            y = y + r_ref[...].astype(jnp.float32)
        return y.astype(o_ref.dtype)

    if has_ln:
        # K is untiled when LN is fused (single k step).  Normalize only once
        # per row tile (j == 0) and reuse the bf16 cache for every output tile.
        @pl.when(pl.program_id(1) == 0)
        def _():
            x = x_ref[...].astype(jnp.float32)
            mu = jnp.mean(x, axis=-1, keepdims=True)
            var = jnp.mean(jnp.square(x - mu), axis=-1, keepdims=True)
            xn = (x - mu) * lax.rsqrt(var + eps)
            xn = xn * g_ref[...] + be_ref[...]
            xn_ref[...] = xn.astype(jnp.bfloat16)

        y = jnp.dot(xn_ref[...], w_ref[...].astype(jnp.bfloat16),
                    preferred_element_type=jnp.float32)
        o_ref[...] = epilogue(y)
    elif multi_k:
        k = pl.program_id(2)

        @pl.when(k == 0)
        def _():
            acc_ref[...] = jnp.zeros_like(acc_ref)

        acc_ref[...] += jnp.dot(x_ref[...].astype(jnp.bfloat16),
                                w_ref[...].astype(jnp.bfloat16),
                                preferred_element_type=jnp.float32)

        @pl.when(k == pl.num_programs(2) - 1)
        def _():
            o_ref[...] = epilogue(acc_ref[...])
    else:
        # gk == 1: no accumulator scratch, write the tile directly.
        y = jnp.dot(x_ref[...].astype(jnp.bfloat16),
                    w_ref[...].astype(jnp.bfloat16),
                    preferred_element_type=jnp.float32)
        o_ref[...] = epilogue(y)


def pallas_linear(x2d, w, b=None, *, act=None, residual=None, ln=None,
                  eps=1e-5, out_dtype=jnp.bfloat16):
    """y = act(LN?(x2d) @ w + b) + residual, fused into one tiled Pallas call.

    x2d: (M, K); w: (K, N) pre-cast to bf16; b: (N,) f32 or None;
    residual: (M, N) or None; ln: (gamma, beta) of length K.
    """
    M, K = x2d.shape
    N = w.shape[1]
    has_bias = b is not None
    has_res = residual is not None
    has_ln = ln is not None

    # --- row tile: >=16 rows (bf16 sublane packing), pad M instead of shrinking
    if M >= 256:
        tm = 256
    else:
        tm = _round_up(max(M, 16), 16)
    Mp = _round_up(M, tm)
    if Mp != M:
        x2d = jnp.pad(x2d, ((0, Mp - M), (0, 0)))
        if has_res:
            residual = jnp.pad(residual, ((0, Mp - M), (0, 0)))

    tn = _pick_tile(N, 512, 128)
    tk = K if has_ln else _pick_tile(K, 1024, 128)   # LN prologue needs full K
    gm, gn, gk = Mp // tm, N // tn, K // tk
    multi_k = gk > 1

    kernel = partial(_matmul_kernel, has_ln=has_ln, has_bias=has_bias,
                     has_res=has_res, act=act, eps=eps, multi_k=multi_k)

    in_specs = [
        pl.BlockSpec((tm, tk), lambda i, j, k: (i, k)),
        pl.BlockSpec((tk, tn), lambda i, j, k: (k, j)),
    ]
    args = [x2d, w]
    if has_ln:
        g, beta = ln
        in_specs += [pl.BlockSpec((1, K), lambda i, j, k: (0, 0)),
                     pl.BlockSpec((1, K), lambda i, j, k: (0, 0))]
        args += [jnp.reshape(g, (1, K)).astype(jnp.float32),
                 jnp.reshape(beta, (1, K)).astype(jnp.float32)]
    if has_bias:
        in_specs.append(pl.BlockSpec((1, tn), lambda i, j, k: (0, j)))
        args.append(jnp.reshape(b, (1, N)).astype(jnp.float32))
    if has_res:
        in_specs.append(pl.BlockSpec((tm, tn), lambda i, j, k: (i, j)))
        args.append(residual)

    scratch_shapes = []
    if has_ln:
        scratch_shapes.append(pltpu.VMEM((tm, K), jnp.bfloat16))
    if multi_k:
        scratch_shapes.append(pltpu.VMEM((tm, tn), jnp.float32))

    # LN cache persists across the j axis -> keep j sequential ("arbitrary").
    if has_ln:
        dims = ("parallel", "arbitrary", "arbitrary")
    else:
        dims = ("parallel", "parallel", "arbitrary")

    flops = 2 * Mp * N * K
    bytes_accessed = 2 * (Mp * K + K * N + Mp * N) + (2 * Mp * N if has_res else 0)
    transcendentals = Mp * N if act == 'gelu' else 0

    out = pl.pallas_call(
        kernel,
        out_shape=jax.ShapeDtypeStruct((Mp, N), out_dtype),
        grid=(gm, gn, gk),
        in_specs=in_specs,
        out_specs=pl.BlockSpec((tm, tn), lambda i, j, k: (i, j)),
        scratch_shapes=scratch_shapes,
        compiler_params=pltpu.CompilerParams(
            dimension_semantics=dims,
            vmem_limit_bytes=_vmem_limit_bytes(),
        ),
        cost_estimate=pl.CostEstimate(flops=flops,
                                      transcendentals=transcendentals,
                                      bytes_accessed=bytes_accessed),
    )(*args)
    return out[:M] if Mp != M else out


# ----------------------------------------------------------------------------
# Attention kernel: all heads of one batch element per grid step, reads the
# fused qkv tensor directly (no XLA transposes), writes a lane-dense (T, D)
# output block.  Softmax scale is pre-folded into the q columns of qkv_w.
# ----------------------------------------------------------------------------

def _attn_kernel(qkv_ref, o_ref, *, num_heads, head_dim):
    D = num_heads * head_dim
    # Static per-head slices of the (1, T, 3*D) bf16 block; column layout is
    # [q | k | v] with heads-major inside each third (natural qkv-matmul layout).
    for h in range(num_heads):
        lo = h * head_dim
        q = qkv_ref[0, :, lo:lo + head_dim]                  # (T, Dh) bf16
        k = qkv_ref[0, :, D + lo:D + lo + head_dim]          # (T, Dh) bf16
        v = qkv_ref[0, :, 2 * D + lo:2 * D + lo + head_dim]  # (T, Dh) bf16
        # q @ k^T on the MXU (contract the head dim of both operands).
        s = lax.dot_general(q, k, (((1,), (1,)), ((), ())),
                            preferred_element_type=jnp.float32)   # (T, T) f32
        s = s - jnp.max(s, axis=-1, keepdims=True)
        p = jnp.exp(s)
        l = jnp.sum(p, axis=-1, keepdims=True)
        o_h = jnp.dot(p.astype(jnp.bfloat16), v,
                      preferred_element_type=jnp.float32)          # (T, Dh) f32
        # Normalize AFTER the PV matmul: T*Dh multiplies instead of T*T.
        o_h = o_h * pl.reciprocal(l, approx=True)
        o_ref[0, :, lo:lo + head_dim] = o_h.astype(o_ref.dtype)


def pallas_attention(qkv3d, num_heads, head_dim, out_dtype=jnp.bfloat16):
    """qkv3d: (B, T, 3*H*Dh) bf16 (fused qkv matmul output). Returns (B, T, H*Dh).

    Grid is (B,) marked "parallel" (B>=2 keeps both v7x TensorCores busy); a
    query-block axis could be added for very long sequences.
    """
    B, T, threeD = qkv3d.shape
    D = num_heads * head_dim
    assert threeD == 3 * D
    kernel = partial(_attn_kernel, num_heads=num_heads, head_dim=head_dim)
    return pl.pallas_call(
        kernel,
        out_shape=jax.ShapeDtypeStruct((B, T, D), out_dtype),
        grid=(B,),
        in_specs=[pl.BlockSpec((1, T, 3 * D), lambda b: (b, 0, 0))],
        out_specs=pl.BlockSpec((1, T, D), lambda b: (b, 0, 0)),
        compiler_params=pltpu.CompilerParams(
            dimension_semantics=("parallel",),
            vmem_limit_bytes=_vmem_limit_bytes(),
        ),
    )(qkv3d)


# ----------------------------------------------------------------------------
# Model pieces (glue in plain JAX; all matmuls / LN / softmax via Pallas)
# ----------------------------------------------------------------------------

def get_sinusoid_encoding_table(n_position, d_hid):
    pos = np.arange(n_position, dtype=np.float64)[:, None]
    hid = np.arange(d_hid)[None, :]
    angle = pos / np.power(10000.0, 2.0 * (hid // 2) / d_hid)
    table = np.zeros((n_position, d_hid), dtype=np.float64)
    table[:, 0::2] = np.sin(angle[:, 0::2])
    table[:, 1::2] = np.cos(angle[:, 1::2])
    return jnp.asarray(table[None], dtype=jnp.float32)  # (1, N, D)


def block_forward(x, p, num_heads):
    """Transformer Block (pre-norm, no drop_path, init_values=0 -> no gamma)."""
    B, T, D = x.shape
    Dh = D // num_heads
    x2d = x.reshape(B * T, D)

    # attention: LN fused into the qkv matmul prologue (qkv_bias=False);
    # softmax scale is already folded into the q columns of qkv_w.
    qkv = pallas_linear(x2d, p['qkv_w'], None, ln=(p['n1w'], p['n1b']))   # (B*T, 3D)
    o = pallas_attention(qkv.reshape(B, T, 3 * D), num_heads, Dh)          # (B, T, D)
    # projection with the residual add fused into the epilogue
    x2d = pallas_linear(o.reshape(B * T, D), p['proj_w'], p['proj_b'], residual=x2d)

    # MLP: LN fused into fc1, exact GELU fused, residual fused into fc2
    h1 = pallas_linear(x2d, p['fc1_w'], p['fc1_b'], act='gelu', ln=(p['n2w'], p['n2b']))
    x2d = pallas_linear(h1, p['fc2_w'], p['fc2_b'], residual=x2d)
    return x2d.reshape(B, T, D)


def encoder_forward(x_img, mask_bool, params, cfg):
    B, C, H, W = x_img.shape
    p = cfg['patch_size']
    gh, gw = H // p, W // p
    NP = gh * gw
    D = cfg['enc_dim']

    # PatchEmbed Conv2d(k=p, stride=p) == patch extraction (XLA glue) + Pallas matmul.
    patches = x_img.reshape(B, C, gh, p, gw, p).transpose(0, 2, 4, 1, 3, 5)
    patches = patches.reshape(B * NP, C * p * p)
    x = pallas_linear(patches, params['patch_w'], params['patch_b']).reshape(B, NP, D)

    x = x + params['enc_pos_embed']                        # sinusoid, detached constant
    # Spec semantics: zero-mask (torch.where); masked tokens still go through blocks.
    x_vis = jnp.where(mask_bool[:, :, None], x, jnp.zeros_like(x))

    for blk in params['enc_blocks']:
        x_vis = block_forward(x_vis, blk, cfg['enc_heads'])
    # encoder.norm is fused into the encoder_to_decoder matmul (head = Identity)
    return x_vis


def decoder_forward(x, return_token_num, params, cfg):
    for blk in params['dec_blocks']:
        x = block_forward(x, blk, cfg['dec_heads'])
    x = x[:, -return_token_num:]
    B, T, D = x.shape
    # decoder final LayerNorm fused into the head matmul prologue
    out = pallas_linear(x.reshape(B * T, D), params['head_w'], params['head_b'],
                        ln=(params['dec_norm_w'], params['dec_norm_b']),
                        out_dtype=jnp.float32)
    return out.reshape(B, T, -1)


def model_forward(params, x_img, mask_bool, cfg):
    B = x_img.shape[0]
    NP = cfg['num_patches']
    enc_D, dec_D = cfg['enc_dim'], cfg['dec_dim']

    x_vis = encoder_forward(x_img, mask_bool, params, cfg)             # (B, NP, enc_D)
    # encoder.norm fused into the (bias-free) encoder_to_decoder matmul
    x_vis = pallas_linear(x_vis.reshape(B * NP, enc_D), params['e2d_w'], None,
                          ln=(params['enc_norm_w'], params['enc_norm_b']))
    x_vis = x_vis.reshape(B, NP, dec_D)

    expand_pos = jnp.broadcast_to(params['dec_pos_embed'], (B, NP, dec_D))
    m = mask_bool[:, :, None]
    pos_vis = jnp.where(m, expand_pos, jnp.zeros_like(expand_pos))
    pos_mask = jnp.where(~m, expand_pos, jnp.zeros_like(expand_pos))

    x_full = jnp.concatenate([x_vis + pos_vis, params['mask_token'] + pos_mask], axis=1)
    return decoder_forward(x_full, NP, params, cfg)        # (B, NP, 3*patch**2)


# ----------------------------------------------------------------------------
# parsing_mask: data-dependent host-side loop (mirrors the PyTorch code).
# TODO(synk): torch.randperm-driven patch masking has no Pallas equivalent; done in NumPy.
# ----------------------------------------------------------------------------

def parsing_mask_np(img_shape, parsing_face, patch_size, num_patches, seed=0):
    B, _, H, W = img_shape
    ratio = 0.3
    rng = np.random.RandomState(seed)
    mask_arr = np.zeros((B, num_patches), dtype=np.int16)
    mask_part = rng.permutation(13)[:8] + 1
    side = int(math.sqrt(num_patches))
    for bs in range(B):
        for pi in mask_part:
            for i in range(H // patch_size):
                for j in range(W // patch_size):
                    patch_part = parsing_face[bs,
                                              i * patch_size:(i + 1) * patch_size,
                                              j * patch_size:(j + 1) * patch_size]
                    count = np.sum(patch_part == pi)
                    if count / (patch_size * patch_size) >= ratio:
                        mask_arr[bs, i * side + j] = 1
    return mask_arr


# ----------------------------------------------------------------------------
# Parameter initialization + one-time kernel-friendly preparation
# ----------------------------------------------------------------------------

def xavier_uniform(key, shape):
    fan_in, fan_out = shape[0], shape[1]
    limit = math.sqrt(6.0 / (fan_in + fan_out))
    return jax.random.uniform(key, shape, jnp.float32, -limit, limit)


def init_block_params(key, dim, hidden):
    ks = jax.random.split(key, 4)
    return dict(
        n1w=jnp.ones((dim,), jnp.float32), n1b=jnp.zeros((dim,), jnp.float32),
        qkv_w=xavier_uniform(ks[0], (dim, 3 * dim)),
        proj_w=xavier_uniform(ks[1], (dim, dim)), proj_b=jnp.zeros((dim,), jnp.float32),
        n2w=jnp.ones((dim,), jnp.float32), n2b=jnp.zeros((dim,), jnp.float32),
        fc1_w=xavier_uniform(ks[2], (dim, hidden)), fc1_b=jnp.zeros((hidden,), jnp.float32),
        fc2_w=xavier_uniform(ks[3], (hidden, dim)), fc2_b=jnp.zeros((dim,), jnp.float32),
    )


def init_params(key, cfg):
    C, p = cfg['in_chans'], cfg['patch_size']
    enc_D, dec_D = cfg['enc_dim'], cfg['dec_dim']
    NP = cfg['num_patches']
    patch_dim = C * p * p
    dec_classes = 3 * p * p

    keys = jax.random.split(key, 6 + cfg['enc_depth'] + cfg['dec_depth'])
    ki = iter(keys)

    bound = 1.0 / math.sqrt(patch_dim)
    patch_w = jax.random.uniform(next(ki), (patch_dim, enc_D), jnp.float32, -bound, bound)
    patch_b = jax.random.uniform(next(ki), (enc_D,), jnp.float32, -bound, bound)

    enc_blocks = [init_block_params(next(ki), enc_D, int(enc_D * cfg['mlp_ratio']))
                  for _ in range(cfg['enc_depth'])]
    dec_blocks = [init_block_params(next(ki), dec_D, int(dec_D * cfg['mlp_ratio']))
                  for _ in range(cfg['dec_depth'])]

    e2d_w = xavier_uniform(next(ki), (enc_D, dec_D))
    head_w = xavier_uniform(next(ki), (dec_D, dec_classes))
    mask_token = 0.02 * jax.random.truncated_normal(next(ki), -1.0, 1.0, (1, 1, dec_D), jnp.float32)

    return dict(
        patch_w=patch_w, patch_b=patch_b,
        enc_pos_embed=get_sinusoid_encoding_table(NP, enc_D),
        enc_blocks=enc_blocks,
        enc_norm_w=jnp.ones((enc_D,), jnp.float32), enc_norm_b=jnp.zeros((enc_D,), jnp.float32),
        e2d_w=e2d_w,
        mask_token=mask_token,
        dec_pos_embed=get_sinusoid_encoding_table(NP, dec_D),
        dec_blocks=dec_blocks,
        dec_norm_w=jnp.ones((dec_D,), jnp.float32), dec_norm_b=jnp.zeros((dec_D,), jnp.float32),
        head_w=head_w, head_b=jnp.zeros((dec_classes,), jnp.float32),
    )


def prepare_params(params, cfg):
    """One-time prep: cast GEMM weights / pos tables / mask token to bf16 and
    fold the attention softmax scale into the q columns of qkv_w."""
    def prep_block(bp, dim, heads):
        dh = dim // heads
        scale = cfg.get('qk_scale', None) or dh ** -0.5
        qkv_w = bp['qkv_w'].at[:, :dim].multiply(scale)     # fold scale into W_q
        return dict(
            n1w=bp['n1w'], n1b=bp['n1b'], n2w=bp['n2w'], n2b=bp['n2b'],
            qkv_w=qkv_w.astype(jnp.bfloat16),
            proj_w=bp['proj_w'].astype(jnp.bfloat16), proj_b=bp['proj_b'],
            fc1_w=bp['fc1_w'].astype(jnp.bfloat16), fc1_b=bp['fc1_b'],
            fc2_w=bp['fc2_w'].astype(jnp.bfloat16), fc2_b=bp['fc2_b'],
        )

    new = dict(params)
    new['patch_w'] = params['patch_w'].astype(jnp.bfloat16)
    new['e2d_w'] = params['e2d_w'].astype(jnp.bfloat16)
    new['head_w'] = params['head_w'].astype(jnp.bfloat16)
    new['enc_pos_embed'] = params['enc_pos_embed'].astype(jnp.bfloat16)
    new['dec_pos_embed'] = params['dec_pos_embed'].astype(jnp.bfloat16)
    new['mask_token'] = params['mask_token'].astype(jnp.bfloat16)
    new['enc_blocks'] = [prep_block(bp, cfg['enc_dim'], cfg['enc_heads'])
                         for bp in params['enc_blocks']]
    new['dec_blocks'] = [prep_block(bp, cfg['dec_dim'], cfg['dec_heads'])
                         for bp in params['dec_blocks']]
    return new


# ----------------------------------------------------------------------------
# main
# ----------------------------------------------------------------------------

if __name__ == "__main__":
    # Small-shape config consistent with the module (decoder num_classes == 3*patch**2).
    cfg = dict(
        img_size=16, patch_size=8, in_chans=3,
        enc_dim=32, enc_depth=2, enc_heads=4,
        dec_dim=32, dec_depth=2, dec_heads=4,
        mlp_ratio=4.0,
    )
    cfg['num_patches'] = (cfg['img_size'] // cfg['patch_size']) ** 2   # 4

    B, C, H, W = 2, cfg['in_chans'], cfg['img_size'], cfg['img_size']
    p = cfg['patch_size']
    gh, gw = H // p, W // p

    key = jax.random.PRNGKey(0)
    k_img, k_params = jax.random.split(key)

    x = jax.random.normal(k_img, (B, C, H, W), jnp.float32)

    # Deterministic face-parsing map: each patch region is entirely one class in 1..13.
    cls = (np.arange(gh * gw).reshape(gh, gw) % 13)
    parsing = np.stack(
        [np.kron(((cls + b) % 13) + 1, np.ones((p, p), dtype=np.int32)) for b in range(B)],
        axis=0,
    )  # (B, H, W)

    mask_np = parsing_mask_np((B, C, H, W), parsing, p, cfg['num_patches'], seed=0)
    mask_bool = jnp.asarray(mask_np.astype(bool))

    params = prepare_params(init_params(k_params, cfg), cfg)

    fwd = jax.jit(partial(model_forward, cfg=cfg))
    out = fwd(params, x, mask_bool)
    out = jax.block_until_ready(out)

    expected = (B, cfg['num_patches'], 3 * p * p)
    assert out.shape == expected, (out.shape, expected)
    assert bool(jnp.all(jnp.isfinite(out)))
    print("KERNEL_OK")
</pallas_src>

<mosaic_0001>
module attributes {stable_mosaic.version = 11 : i64} {
  func.func @_matmul_kernel(%arg0: i32, %arg1: i32, %arg2: i32, %arg3: memref<16x192xf32, #tpu.memory_space<vmem>>, %arg4: memref<192x32xbf16, #tpu.memory_space<vmem>>, %arg5: memref<1x32xf32, #tpu.memory_space<vmem>>, %arg6: memref<16x32xbf16, #tpu.memory_space<vmem>>) attributes {dimension_semantics = [#tpu.dimension_semantics<parallel>, #tpu.dimension_semantics<parallel>, #tpu.dimension_semantics<arbitrary>], iteration_bounds = array<i64: 1, 1, 1>, scalar_prefetch = 0 : i64, scratch_operands = 0 : i64, tpu.core_type = #tpu.core_type<tc>, window_params = [{transform_indices = @transform_0, window_bounds = array<i64: 16, 192>}, {transform_indices = @transform_1, window_bounds = array<i64: 192, 32>}, {transform_indices = @transform_2, window_bounds = array<i64: 1, 32>}, {transform_indices = @transform_3, window_bounds = array<i64: 16, 32>}]} {
    %c0 = arith.constant 0 : index
    %c0_0 = arith.constant 0 : index
    %0 = vector.load %arg3[%c0, %c0_0] : memref<16x192xf32, #tpu.memory_space<vmem>>, vector<16x192xf32>
    %1 = arith.truncf %0 : vector<16x192xf32> to vector<16x192xbf16>
    %c0_1 = arith.constant 0 : index
    %c0_2 = arith.constant 0 : index
    %2 = vector.load %arg4[%c0_1, %c0_2] : memref<192x32xbf16, #tpu.memory_space<vmem>>, vector<192x32xbf16>
    %cst = arith.constant dense<0.000000e+00> : vector<16x32xf32>
    %3 = tpu.matmul %1, %2, %cst {dimension_numbers = #tpu.dot_dimension_numbers<[1], [0], [0], [1], [0, 0, 1, 1], [], []>} : vector<16x192xbf16>, vector<192x32xbf16>, vector<16x32xf32> -> vector<16x32xf32>
    %c0_3 = arith.constant 0 : index
    %c0_4 = arith.constant 0 : index
    %4 = vector.load %arg5[%c0_3, %c0_4] : memref<1x32xf32, #tpu.memory_space<vmem>>, vector<1x32xf32>
    %5 = vector.broadcast %4 : vector<1x32xf32> to vector<16x32xf32>
    %6 = arith.addf %3, %5 : vector<16x32xf32>
    %7 = arith.truncf %6 : vector<16x32xf32> to vector<16x32xbf16>
    %c0_5 = arith.constant 0 : index
    %c0_6 = arith.constant 0 : index
    %8 = vector.load %arg6[%c0_5, %c0_6] : memref<16x32xbf16, #tpu.memory_space<vmem>>, vector<16x32xbf16>
    tpu.vector_store %arg6[%c0_5, %c0_6], %7 {strides = array<i32>} : memref<16x32xbf16, #tpu.memory_space<vmem>>, vector<16x32xbf16>,
    return
  }
  func.func @transform_0(%arg0: i32, %arg1: i32, %arg2: i32) -> (i32, i32) {
    %c0_i32 = arith.constant 0 : i32
    return %arg0, %arg2 : i32, i32
  }
  func.func @transform_1(%arg0: i32, %arg1: i32, %arg2: i32) -> (i32, i32) {
    %c0_i32 = arith.constant 0 : i32
    return %arg2, %arg1 : i32, i32
  }
  func.func @transform_2(%arg0: i32, %arg1: i32, %arg2: i32) -> (i32, i32) {
    %c0_i32 = arith.constant 0 : i32
    %c0_i32_0 = arith.constant 0 : i32
    return %c0_i32, %arg1 : i32, i32
  }
  func.func @transform_3(%arg0: i32, %arg1: i32, %arg2: i32) -> (i32, i32) {
    %c0_i32 = arith.constant 0 : i32
    return %arg0, %arg1 : i32, i32
  }
}

module attributes {stable_mosaic.version = 11 : i64} {
  func.func @_matmul_kernel(%arg0: i32, %arg1: i32, %arg2: i32, %arg3: memref<16x32xbf16, #tpu.memory_space<vmem>>, %arg4: memref<32x32xbf16, #tpu.memory_space<vmem>>, %arg5: memref<1x32xf32, #tpu.memory_space<vmem>>, %arg6: memref<16x32xbf16, #tpu.memory_space<vmem>>, %arg7: memref<16x32xbf16, #tpu.memory_space<vmem>>) attributes {dimension_semantics = [#tpu.dimension_semantics<parallel>, #tpu.dimension_semantics<parallel>, #tpu.dimension_semantics<arbitrary>], iteration_bounds = array<i64: 1, 1, 1>, scalar_prefetch = 0 : i64, scratch_operands = 0 : i64, tpu.core_type = #tpu.core_type<tc>, window_params = [{transform_indices = @transform_0, window_bounds = array<i64: 16, 32>}, {transform_indices = @transform_1, window_bounds = array<i64: 32, 32>}, {transform_indices = @transform_2, window_bounds = array<i64: 1, 32>}, {transform_indices = @transform_3, window_bounds = array<i64: 16, 32>}, {transform_indices = @transform_4, window_bounds = array<i64: 16, 32>}]} {
    %c0 = arith.constant 0 : index
    %c0_0 = arith.constant 0 : index
    %0 = vector.load %arg3[%c0, %c0_0] : memref<16x32xbf16, #tpu.memory_space<vmem>>, vector<16x32xbf16>
    %c0_1 = arith.constant 0 : index
    %c0_2 = arith.constant 0 : index
    %1 = vector.load %arg4[%c0_1, %c0_2] : memref<32x32xbf16, #tpu.memory_space<vmem>>, vector<32x32xbf16>
    %cst = arith.constant dense<0.000000e+00> : vector<16x32xf32>
    %2 = tpu.matmul %0, %1, %cst {dimension_numbers = #tpu.dot_dimension_numbers<[1], [0], [0], [1], [0, 0, 1, 1], [], []>} : vector<16x32xbf16>, vector<32x32xbf16>, vector<16x32xf32> -> vector<16x32xf32>
    %c0_3 = arith.constant 0 : index
    %c0_4 = arith.constant 0 : index
    %3 = vector.load %arg5[%c0_3, %c0_4] : memref<1x32xf32, #tpu.memory_space<vmem>>, vector<1x32xf32>
    %4 = vector.broadcast %3 : vector<1x32xf32> to vector<16x32xf32>
    %5 = arith.addf %2, %4 : vector<16x32xf32>
    %c0_5 = arith.constant 0 : index
    %c0_6 = arith.constant 0 : index
    %6 = vector.load %arg6[%c0_5, %c0_6] : memref<16x32xbf16, #tpu.memory_space<vmem>>, vector<16x32xbf16>
    %7 = arith.extf %6 : vector<16x32xbf16> to vector<16x32xf32>
    %8 = arith.addf %5, %7 : vector<16x32xf32>
    %9 = arith.truncf %8 : vector<16x32xf32> to vector<16x32xbf16>
    %c0_7 = arith.constant 0 : index
    %c0_8 = arith.constant 0 : index
    %10 = vector.load %arg7[%c0_7, %c0_8] : memref<16x32xbf16, #tpu.memory_space<vmem>>, vector<16x32xbf16>
    tpu.vector_store %arg7[%c0_7, %c0_8], %9 {strides = array<i32>} : memref<16x32xbf16, #tpu.memory_space<vmem>>, vector<16x32xbf16>,
    return
  }
  func.func @transform_0(%arg0: i32, %arg1: i32, %arg2: i32) -> (i32, i32) {
    %c0_i32 = arith.constant 0 : i32
    return %arg0, %arg2 : i32, i32
  }
  func.func @transform_1(%arg0: i32, %arg1: i32, %arg2: i32) -> (i32, i32) {
    %c0_i32 = arith.constant 0 : i32
    return %arg2, %arg1 : i32, i32
  }
  func.func @transform_2(%arg0: i32, %arg1: i32, %arg2: i32) -> (i32, i32) {
    %c0_i32 = arith.constant 0 : i32
    %c0_i32_0 = arith.constant 0 : i32
    return %c0_i32, %arg1 : i32, i32
  }
  func.func @transform_3(%arg0: i32, %arg1: i32, %arg2: i32) -> (i32, i32) {
    %c0_i32 = arith.constant 0 : i32
    return %arg0, %arg1 : i32, i32
  }
  func.func @transform_4(%arg0: i32, %arg1: i32, %arg2: i32) -> (i32, i32) {
    %c0_i32 = arith.constant 0 : i32
    return %arg0, %arg1 : i32, i32
  }
}

module attributes {stable_mosaic.version = 11 : i64} {
  func.func @_matmul_kernel(%arg0: i32, %arg1: i32, %arg2: i32, %arg3: memref<16x32xbf16, #tpu.memory_space<vmem>>, %arg4: memref<32x96xbf16, #tpu.memory_space<vmem>>, %arg5: memref<1x32xf32, #tpu.memory_space<vmem>>, %arg6: memref<1x32xf32, #tpu.memory_space<vmem>>, %arg7: memref<16x96xbf16, #tpu.memory_space<vmem>>, %arg8: memref<16x32xbf16, #tpu.memory_space<vmem>>) attributes {dimension_semantics = [#tpu.dimension_semantics<parallel>, #tpu.dimension_semantics<arbitrary>, #tpu.dimension_semantics<arbitrary>], iteration_bounds = array<i64: 1, 1, 1>, scalar_prefetch = 0 : i64, scratch_operands = 1 : i64, tpu.core_type = #tpu.core_type<tc>, window_params = [{transform_indices = @transform_0, window_bounds = array<i64: 16, 32>}, {transform_indices = @transform_1, window_bounds = array<i64: 32, 96>}, {pipeline_mode = #tpu.pipeline_mode<synchronous>, transform_indices = @transform_2, window_bounds = array<i64: 1, 32>}, {pipeline_mode = #tpu.pipeline_mode<synchronous>, transform_indices = @transform_3, window_bounds = array<i64: 1, 32>}, {transform_indices = @transform_4, window_bounds = array<i64: 16, 96>}]} {
    %c0_i32 = arith.constant 0 : i32
    %0 = arith.cmpi eq, %arg1, %c0_i32 : i32
    %1 = arith.extui %0 : i1 to i32
    %c0_i32_0 = arith.constant 0 : i32
    %2 = arith.cmpi ne, %1, %c0_i32_0 : i32
    scf.if %2 {
      %c0_6 = arith.constant 0 : index
      %c0_7 = arith.constant 0 : index
      %8 = vector.load %arg3[%c0_6, %c0_7] : memref<16x32xbf16, #tpu.memory_space<vmem>>, vector<16x32xbf16>
      %9 = arith.extf %8 : vector<16x32xbf16> to vector<16x32xf32>
      %cst_8 = arith.constant dense<0.000000e+00> : vector<16xf32>
      %10 = vector.multi_reduction <add>, %9, %cst_8 [1] : vector<16x32xf32> to vector<16xf32>
      %11 = vector.shape_cast %10 : vector<16xf32> to vector<16x1xf32>
      %cst_9 = arith.constant 3.200000e+01 : f32
      %12 = vector.broadcast %cst_9 : f32 to vector<16x1xf32>
      %13 = arith.divf %11, %12 : vector<16x1xf32>
      %14 = vector.broadcast %13 : vector<16x1xf32> to vector<16x32xf32>
      %15 = arith.subf %9, %14 : vector<16x32xf32>
      %16 = arith.mulf %15, %15 : vector<16x32xf32>
      %cst_10 = arith.constant dense<0.000000e+00> : vector<16xf32>
      %17 = vector.multi_reduction <add>, %16, %cst_10 [1] : vector<16x32xf32> to vector<16xf32>
      %18 = vector.shape_cast %17 : vector<16xf32> to vector<16x1xf32>
      %cst_11 = arith.constant 3.200000e+01 : f32
      %19 = vector.broadcast %cst_11 : f32 to vector<16x1xf32>
      %20 = arith.divf %18, %19 : vector<16x1xf32>
      %21 = vector.broadcast %13 : vector<16x1xf32> to vector<16x32xf32>
      %22 = arith.subf %9, %21 : vector<16x32xf32>
      %cst_12 = arith.constant 9.99999974E-6 : f32
      %23 = vector.broadcast %cst_12 : f32 to vector<16x1xf32>
      %24 = arith.addf %20, %23 : vector<16x1xf32>
      %25 = math.rsqrt %24 : vector<16x1xf32>
      %26 = vector.broadcast %25 : vector<16x1xf32> to vector<16x32xf32>
      %27 = arith.mulf %22, %26 : vector<16x32xf32>
      %c0_13 = arith.constant 0 : index
      %c0_14 = arith.constant 0 : index
      %28 = vector.load %arg5[%c0_13, %c0_14] : memref<1x32xf32, #tpu.memory_space<vmem>>, vector<1x32xf32>
      %29 = vector.broadcast %28 : vector<1x32xf32> to vector<16x32xf32>
      %30 = arith.mulf %27, %29 : vector<16x32xf32>
      %c0_15 = arith.constant 0 : index
      %c0_16 = arith.constant 0 : index
      %31 = vector.load %arg6[%c0_15, %c0_16] : memref<1x32xf32, #tpu.memory_space<vmem>>, vector<1x32xf32>
      %32 = vector.broadcast %31 : vector<1x32xf32> to vector<16x32xf32>
      %33 = arith.addf %30, %32 : vector<16x32xf32>
      %34 = arith.truncf %33 : vector<16x32xf32> to vector<16x32xbf16>
      %c0_17 = arith.constant 0 : index
      %c0_18 = arith.constant 0 : index
      %35 = vector.load %arg8[%c0_17, %c0_18] : memref<16x32xbf16, #tpu.memory_space<vmem>>, vector<16x32xbf16>
      tpu.vector_store %arg8[%c0_17, %c0_18], %34 {strides = array<i32>} : memref<16x32xbf16, #tpu.memory_space<vmem>>, vector<16x32xbf16>,
    } else {
    }
    %c0 = arith.constant 0 : index
    %c0_1 = arith.constant 0 : index
    %3 = vector.load %arg8[%c0, %c0_1] : memref<16x32xbf16, #tpu.memory_space<vmem>>, vector<16x32xbf16>
    %c0_2 = arith.constant 0 : index
    %c0_3 = arith.constant 0 : index
    %4 = vector.load %arg4[%c0_2, %c0_3] : memref<32x96xbf16, #tpu.memory_space<vmem>>, vector<32x96xbf16>
    %cst = arith.constant dense<0.000000e+00> : vector<16x96xf32>
    %5 = tpu.matmul %3, %4, %cst {dimension_numbers = #tpu.dot_dimension_numbers<[1], [0], [0], [1], [0, 0, 1, 1], [], []>} : vector<16x32xbf16>, vector<32x96xbf16>, vector<16x96xf32> -> vector<16x96xf32>
    %6 = arith.truncf %5 : vector<16x96xf32> to vector<16x96xbf16>
    %c0_4 = arith.constant 0 : index
    %c0_5 = arith.constant 0 : index
    %7 = vector.load %arg7[%c0_4, %c0_5] : memref<16x96xbf16, #tpu.memory_space<vmem>>, vector<16x96xbf16>
    tpu.vector_store %arg7[%c0_4, %c0_5], %6 {strides = array<i32>} : memref<16x96xbf16, #tpu.memory_space<vmem>>, vector<16x96xbf16>,
    return
  }
  func.func @transform_0(%arg0: i32, %arg1: i32, %arg2: i32) -> (i32, i32) {
    %c0_i32 = arith.constant 0 : i32
    return %arg0, %arg2 : i32, i32
  }
  func.func @transform_1(%arg0: i32, %arg1: i32, %arg2: i32) -> (i32, i32) {
    %c0_i32 = arith.constant 0 : i32
    return %arg2, %arg1 : i32, i32
  }
  func.func @transform_2(%arg0: i32, %arg1: i32, %arg2: i32) -> (i32, i32) {
    %c0_i32 = arith.constant 0 : i32
    %c0_i32_0 = arith.constant 0 : i32
    %c0_i32_1 = arith.constant 0 : i32
    return %c0_i32, %c0_i32_0 : i32, i32
  }
  func.func @transform_3(%arg0: i32, %arg1: i32, %arg2: i32) -> (i32, i32) {
    %c0_i32 = arith.constant 0 : i32
    %c0_i32_0 = arith.constant 0 : i32
    %c0_i32_1 = arith.constant 0 : i32
    return %c0_i32, %c0_i32_0 : i32, i32
  }
  func.func @transform_4(%arg0: i32, %arg1: i32, %arg2: i32) -> (i32, i32) {
    %c0_i32 = arith.constant 0 : i32
    return %arg0, %arg1 : i32, i32
  }
}

module attributes {stable_mosaic.version = 11 : i64} {
  func.func @_attn_kernel(%arg0: i32, %arg1: memref<1x4x96xbf16, #tpu.memory_space<vmem>>, %arg2: memref<1x4x32xbf16, #tpu.memory_space<vmem>>) attributes {dimension_semantics = [#tpu.dimension_semantics<parallel>], iteration_bounds = array<i64: 2>, scalar_prefetch = 0 : i64, scratch_operands = 0 : i64, tpu.core_type = #tpu.core_type<tc>, window_params = [{transform_indices = @transform_0, window_bounds = array<i64: 1, 4, 96>}, {transform_indices = @transform_1, window_bounds = array<i64: 1, 4, 32>}]} {
    %c0 = arith.constant 0 : index
    %c0_0 = arith.constant 0 : index
    %c0_1 = arith.constant 0 : index
    %0 = vector.load %arg1[%c0, %c0_0, %c0_1] : memref<1x4x96xbf16, #tpu.memory_space<vmem>>, vector<1x4x8xbf16>
    %1 = vector.shape_cast %0 : vector<1x4x8xbf16> to vector<4x8xbf16>
    %c0_2 = arith.constant 0 : index
    %c0_3 = arith.constant 0 : index
    %c32 = arith.constant 32 : index
    %2 = vector.load %arg1[%c0_2, %c0_3, %c32] : memref<1x4x96xbf16, #tpu.memory_space<vmem>>, vector<1x4x8xbf16>
    %3 = vector.shape_cast %2 : vector<1x4x8xbf16> to vector<4x8xbf16>
    %c0_4 = arith.constant 0 : index
    %c0_5 = arith.constant 0 : index
    %c64 = arith.constant 64 : index
    %4 = vector.load %arg1[%c0_4, %c0_5, %c64] : memref<1x4x96xbf16, #tpu.memory_space<vmem>>, vector<1x4x8xbf16>
    %5 = vector.shape_cast %4 : vector<1x4x8xbf16> to vector<4x8xbf16>
    %cst = arith.constant dense<0.000000e+00> : vector<4x4xf32>
    %6 = tpu.matmul %1, %3, %cst {dimension_numbers = #tpu.dot_dimension_numbers<[1], [1], [0], [0], [0, 0, 1, 0], [], []>} : vector<4x8xbf16>, vector<4x8xbf16>, vector<4x4xf32> -> vector<4x4xf32>
    %cst_6 = arith.constant dense<0xFF800000> : vector<4xf32>
    %7 = vector.multi_reduction <maximumf>, %6, %cst_6 [1] : vector<4x4xf32> to vector<4xf32>
    %8 = vector.shape_cast %7 : vector<4xf32> to vector<4x1xf32>
    %9 = vector.broadcast %8 : vector<4x1xf32> to vector<4x4xf32>
    %10 = arith.subf %6, %9 : vector<4x4xf32>
    %11 = math.exp %10 : vector<4x4xf32>
    %cst_7 = arith.constant dense<0.000000e+00> : vector<4xf32>
    %12 = vector.multi_reduction <add>, %11, %cst_7 [1] : vector<4x4xf32> to vector<4xf32>
    %13 = vector.shape_cast %12 : vector<4xf32> to vector<4x1xf32>
    %14 = arith.truncf %11 : vector<4x4xf32> to vector<4x4xbf16>
    %cst_8 = arith.constant dense<0.000000e+00> : vector<4x8xf32>
    %15 = tpu.matmul %14, %5, %cst_8 {dimension_numbers = #tpu.dot_dimension_numbers<[1], [0], [0], [1], [0, 0, 1, 1], [], []>} : vector<4x4xbf16>, vector<4x8xbf16>, vector<4x8xf32> -> vector<4x8xf32>
    %16 = tpu.reciprocal %13 {approx = true} : vector<4x1xf32> -> vector<4x1xf32>
    %17 = vector.broadcast %16 : vector<4x1xf32> to vector<4x8xf32>
    %18 = arith.mulf %15, %17 : vector<4x8xf32>
    %19 = arith.truncf %18 : vector<4x8xf32> to vector<4x8xbf16>
    %c0_9 = arith.constant 0 : index
    %c0_10 = arith.constant 0 : index
    %c0_11 = arith.constant 0 : index
    %20 = vector.load %arg2[%c0_9, %c0_10, %c0_11] : memref<1x4x32xbf16, #tpu.memory_space<vmem>>, vector<1x4x8xbf16>
    %21 = vector.shape_cast %20 : vector<1x4x8xbf16> to vector<4x8xbf16>
    %22 = vector.shape_cast %19 : vector<4x8xbf16> to vector<1x4x8xbf16>
    tpu.vector_store %arg2[%c0_9, %c0_10, %c0_11], %22 {strides = array<i32>} : memref<1x4x32xbf16, #tpu.memory_space<vmem>>, vector<1x4x8xbf16>,
    %c0_12 = arith.constant 0 : index
    %c0_13 = arith.constant 0 : index
    %c8 = arith.constant 8 : index
    %23 = vector.load %arg1[%c0_12, %c0_13, %c8] : memref<1x4x96xbf16, #tpu.memory_space<vmem>>, vector<1x4x8xbf16>
    %24 = vector.shape_cast %23 : vector<1x4x8xbf16> to vector<4x8xbf16>
    %c0_14 = arith.constant 0 : index
    %c0_15 = arith.constant 0 : index
    %c40 = arith.constant 40 : index
    %25 = vector.load %arg1[%c0_14, %c0_15, %c40] : memref<1x4x96xbf16, #tpu.memory_space<vmem>>, vector<1x4x8xbf16>
    %26 = vector.shape_cast %25 : vector<1x4x8xbf16> to vector<4x8xbf16>
    %c0_16 = arith.constant 0 : index
    %c0_17 = arith.constant 0 : index
    %c72 = arith.constant 72 : index
    %27 = vector.load %arg1[%c0_16, %c0_17, %c72] : memref<1x4x96xbf16, #tpu.memory_space<vmem>>, vector<1x4x8xbf16>
    %28 = vector.shape_cast %27 : vector<1x4x8xbf16> to vector<4x8xbf16>
    %cst_18 = arith.constant dense<0.000000e+00> : vector<4x4xf32>
    %29 = tpu.matmul %24, %26, %cst_18 {dimension_numbers = #tpu.dot_dimension_numbers<[1], [1], [0], [0], [0, 0, 1, 0], [], []>} : vector<4x8xbf16>, vector<4x8xbf16>, vector<4x4xf32> -> vector<4x4xf32>
    %cst_19 = arith.constant dense<0xFF800000> : vector<4xf32>
    %30 = vector.multi_reduction <maximumf>, %29, %cst_19 [1] : vector<4x4xf32> to vector<4xf32>
    %31 = vector.shape_cast %30 : vector<4xf32> to vector<4x1xf32>
    %32 = vector.broadcast %31 : vector<4x1xf32> to vector<4x4xf32>
    %33 = arith.subf %29, %32 : vector<4x4xf32>
    %34 = math.exp %33 : vector<4x4xf32>
    %cst_20 = arith.constant dense<0.000000e+00> : vector<4xf32>
    %35 = vector.multi_reduction <add>, %34, %cst_20 [1] : vector<4x4xf32> to vector<4xf32>
    %36 = vector.shape_cast %35 : vector<4xf32> to vector<4x1xf32>
    %37 = arith.truncf %34 : vector<4x4xf32> to vector<4x4xbf16>
    %cst_21 = arith.constant dense<0.000000e+00> : vector<4x8xf32>
    %38 = tpu.matmul %37, %28, %cst_21 {dimension_numbers = #tpu.dot_dimension_numbers<[1], [0], [0], [1], [0, 0, 1, 1], [], []>} : vector<4x4xbf16>, vector<4x8xbf16>, vector<4x8xf32> -> vector<4x8xf32>
    %39 = tpu.reciprocal %36 {approx = true} : vector<4x1xf32> -> vector<4x1xf32>
    %40 = vector.broadcast %39 : vector<4x1xf32> to vector<4x8xf32>
    %41 = arith.mulf %38, %40 : vector<4x8xf32>
    %42 = arith.truncf %41 : vector<4x8xf32> to vector<4x8xbf16>
    %c0_22 = arith.constant 0 : index
    %c0_23 = arith.constant 0 : index
    %c8_24 = arith.constant 8 : index
    %43 = vector.load %arg2[%c0_22, %c0_23, %c8_24] : memref<1x4x32xbf16, #tpu.memory_space<vmem>>, vector<1x4x8xbf16>
    %44 = vector.shape_cast %43 : vector<1x4x8xbf16> to vector<4x8xbf16>
    %45 = vector.shape_cast %42 : vector<4x8xbf16> to vector<1x4x8xbf16>
    tpu.vector_store %arg2[%c0_22, %c0_23, %c8_24], %45 {strides = array<i32>} : memref<1x4x32xbf16, #tpu.memory_space<vmem>>, vector<1x4x8xbf16>,
    %c0_25 = arith.constant 0 : index
    %c0_26 = arith.constant 0 : index
    %c16 = arith.constant 16 : index
    %46 = vector.load %arg1[%c0_25, %c0_26, %c16] : memref<1x4x96xbf16, #tpu.memory_space<vmem>>, vector<1x4x8xbf16>
    %47 = vector.shape_cast %46 : vector<1x4x8xbf16> to vector<4x8xbf16>
    %c0_27 = arith.constant 0 : index
    %c0_28 = arith.constant 0 : index
    %c48 = arith.constant 48 : index
    %48 = vector.load %arg1[%c0_27, %c0_28, %c48] : memref<1x4x96xbf16, #tpu.memory_space<vmem>>, vector<1x4x8xbf16>
    %49 = vector.shape_cast %48 : vector<1x4x8xbf16> to vector<4x8xbf16>
    %c0_29 = arith.constant 0 : index
    %c0_30 = arith.constant 0 : index
    %c80 = arith.constant 80 : index
    %50 = vector.load %arg1[%c0_29, %c0_30, %c80] : memref<1x4x96xbf16, #tpu.memory_space<vmem>>, vector<1x4x8xbf16>
    %51 = vector.shape_cast %50 : vector<1x4x8xbf16> to vector<4x8xbf16>
    %cst_31 = arith.constant dense<0.000000e+00> : vector<4x4xf32>
    %52 = tpu.matmul %47, %49, %cst_31 {dimension_numbers = #tpu.dot_dimension_numbers<[1], [1], [0], [0], [0, 0, 1, 0], [], []>} : vector<4x8xbf16>, vector<4x8xbf16>, vector<4x4xf32> -> vector<4x4xf32>
    %cst_32 = arith.constant dense<0xFF800000> : vector<4xf32>
    %53 = vector.multi_reduction <maximumf>, %52, %cst_32 [1] : vector<4x4xf32> to vector<4xf32>
    %54 = vector.shape_cast %53 : vector<4xf32> to vector<4x1xf32>
    %55 = vector.broadcast %54 : vector<4x1xf32> to vector<4x4xf32>
    %56 = arith.subf %52, %55 : vector<4x4xf32>
    %57 = math.exp %56 : vector<4x4xf32>
    %cst_33 = arith.constant dense<0.000000e+00> : vector<4xf32>
    %58 = vector.multi_reduction <add>, %57, %cst_33 [1] : vector<4x4xf32> to vector<4xf32>
    %59 = vector.shape_cast %58 : vector<4xf32> to vector<4x1xf32>
    %60 = arith.truncf %57 : vector<4x4xf32> to vector<4x4xbf16>
    %cst_34 = arith.constant dense<0.000000e+00> : vector<4x8xf32>
    %61 = tpu.matmul %60, %51, %cst_34 {dimension_numbers = #tpu.dot_dimension_numbers<[1], [0], [0], [1], [0, 0, 1, 1], [], []>} : vector<4x4xbf16>, vector<4x8xbf16>, vector<4x8xf32> -> vector<4x8xf32>
    %62 = tpu.reciprocal %59 {approx = true} : vector<4x1xf32> -> vector<4x1xf32>
    %63 = vector.broadcast %62 : vector<4x1xf32> to vector<4x8xf32>
    %64 = arith.mulf %61, %63 : vector<4x8xf32>
    %65 = arith.truncf %64 : vector<4x8xf32> to vector<4x8xbf16>
    %c0_35 = arith.constant 0 : index
    %c0_36 = arith.constant 0 : index
    %c16_37 = arith.constant 16 : index
    %66 = vector.load %arg2[%c0_35, %c0_36, %c16_37] : memref<1x4x32xbf16, #tpu.memory_space<vmem>>, vector<1x4x8xbf16>
    %67 = vector.shape_cast %66 : vector<1x4x8xbf16> to vector<4x8xbf16>
    %68 = vector.shape_cast %65 : vector<4x8xbf16> to vector<1x4x8xbf16>
    tpu.vector_store %arg2[%c0_35, %c0_36, %c16_37], %68 {strides = array<i32>} : memref<1x4x32xbf16, #tpu.memory_space<vmem>>, vector<1x4x8xbf16>,
    %c0_38 = arith.constant 0 : index
    %c0_39 = arith.constant 0 : index
    %c24 = arith.constant 24 : index
    %69 = vector.load %arg1[%c0_38, %c0_39, %c24] : memref<1x4x96xbf16, #tpu.memory_space<vmem>>, vector<1x4x8xbf16>
    %70 = vector.shape_cast %69 : vector<1x4x8xbf16> to vector<4x8xbf16>
    %c0_40 = arith.constant 0 : index
    %c0_41 = arith.constant 0 : index
    %c56 = arith.constant 56 : index
    %71 = vector.load %arg1[%c0_40, %c0_41, %c56] : memref<1x4x96xbf16, #tpu.memory_space<vmem>>, vector<1x4x8xbf16>
    %72 = vector.shape_cast %71 : vector<1x4x8xbf16> to vector<4x8xbf16>
    %c0_42 = arith.constant 0 : index
    %c0_43 = arith.constant 0 : index
    %c88 = arith.constant 88 : index
    %73 = vector.load %arg1[%c0_42, %c0_43, %c88] : memref<1x4x96xbf16, #tpu.memory_space<vmem>>, vector<1x4x8xbf16>
    %74 = vector.shape_cast %73 : vector<1x4x8xbf16> to vector<4x8xbf16>
    %cst_44 = arith.constant dense<0.000000e+00> : vector<4x4xf32>
    %75 = tpu.matmul %70, %72, %cst_44 {dimension_numbers = #tpu.dot_dimension_numbers<[1], [1], [0], [0], [0, 0, 1, 0], [], []>} : vector<4x8xbf16>, vector<4x8xbf16>, vector<4x4xf32> -> vector<4x4xf32>
    %cst_45 = arith.constant dense<0xFF800000> : vector<4xf32>
    %76 = vector.multi_reduction <maximumf>, %75, %cst_45 [1] : vector<4x4xf32> to vector<4xf32>
    %77 = vector.shape_cast %76 : vector<4xf32> to vector<4x1xf32>
    %78 = vector.broadcast %77 : vector<4x1xf32> to vector<4x4xf32>
    %79 = arith.subf %75, %78 : vector<4x4xf32>
    %80 = math.exp %79 : vector<4x4xf32>
    %cst_46 = arith.constant dense<0.000000e+00> : vector<4xf32>
    %81 = vector.multi_reduction <add>, %80, %cst_46 [1] : vector<4x4xf32> to vector<4xf32>
    %82 = vector.shape_cast %81 : vector<4xf32> to vector<4x1xf32>
    %83 = arith.truncf %80 : vector<4x4xf32> to vector<4x4xbf16>
    %cst_47 = arith.constant dense<0.000000e+00> : vector<4x8xf32>
    %84 = tpu.matmul %83, %74, %cst_47 {dimension_numbers = #tpu.dot_dimension_numbers<[1], [0], [0], [1], [0, 0, 1, 1], [], []>} : vector<4x4xbf16>, vector<4x8xbf16>, vector<4x8xf32> -> vector<4x8xf32>
    %85 = tpu.reciprocal %82 {approx = true} : vector<4x1xf32> -> vector<4x1xf32>
    %86 = vector.broadcast %85 : vector<4x1xf32> to vector<4x8xf32>
    %87 = arith.mulf %84, %86 : vector<4x8xf32>
    %88 = arith.truncf %87 : vector<4x8xf32> to vector<4x8xbf16>
    %c0_48 = arith.constant 0 : index
    %c0_49 = arith.constant 0 : index
    %c24_50 = arith.constant 24 : index
    %89 = vector.load %arg2[%c0_48, %c0_49, %c24_50] : memref<1x4x32xbf16, #tpu.memory_space<vmem>>, vector<1x4x8xbf16>
    %90 = vector.shape_cast %89 : vector<1x4x8xbf16> to vector<4x8xbf16>
    %91 = vector.shape_cast %88 : vector<4x8xbf16> to vector<1x4x8xbf16>
    tpu.vector_store %arg2[%c0_48, %c0_49, %c24_50], %91 {strides = array<i32>} : memref<1x4x32xbf16, #tpu.memory_space<vmem>>, vector<1x4x8xbf16>,
    return
  }
  func.func @transform_0(%arg0: i32) -> (i32, i32, i32) {
    %c0_i32 = arith.constant 0 : i32
    %c0_i32_0 = arith.constant 0 : i32
    %c0_i32_1 = arith.constant 0 : i32
    return %arg0, %c0_i32, %c0_i32_0 : i32, i32, i32
  }
  func.func @transform_1(%arg0: i32) -> (i32, i32, i32) {
    %c0_i32 = arith.constant 0 : i32
    %c0_i32_0 = arith.constant 0 : i32
    %c0_i32_1 = arith.constant 0 : i32
    return %arg0, %c0_i32, %c0_i32_0 : i32, i32, i32
  }
}

module attributes {stable_mosaic.version = 11 : i64} {
  func.func @_matmul_kernel(%arg0: i32, %arg1: i32, %arg2: i32, %arg3: memref<16x32xbf16, #tpu.memory_space<vmem>>, %arg4: memref<32x128xbf16, #tpu.memory_space<vmem>>, %arg5: memref<1x32xf32, #tpu.memory_space<vmem>>, %arg6: memref<1x32xf32, #tpu.memory_space<vmem>>, %arg7: memref<1x128xf32, #tpu.memory_space<vmem>>, %arg8: memref<16x128xbf16, #tpu.memory_space<vmem>>, %arg9: memref<16x32xbf16, #tpu.memory_space<vmem>>) attributes {dimension_semantics = [#tpu.dimension_semantics<parallel>, #tpu.dimension_semantics<arbitrary>, #tpu.dimension_semantics<arbitrary>], iteration_bounds = array<i64: 1, 1, 1>, scalar_prefetch = 0 : i64, scratch_operands = 1 : i64, tpu.core_type = #tpu.core_type<tc>, window_params = [{transform_indices = @transform_0, window_bounds = array<i64: 16, 32>}, {transform_indices = @transform_1, window_bounds = array<i64: 32, 128>}, {pipeline_mode = #tpu.pipeline_mode<synchronous>, transform_indices = @transform_2, window_bounds = array<i64: 1, 32>}, {pipeline_mode = #tpu.pipeline_mode<synchronous>, transform_indices = @transform_3, window_bounds = array<i64: 1, 32>}, {transform_indices = @transform_4, window_bounds = array<i64: 1, 128>}, {transform_indices = @transform_5, window_bounds = array<i64: 16, 128>}]} {
    %c0_i32 = arith.constant 0 : i32
    %0 = arith.cmpi eq, %arg1, %c0_i32 : i32
    %1 = arith.extui %0 : i1 to i32
    %c0_i32_0 = arith.constant 0 : i32
    %2 = arith.cmpi ne, %1, %c0_i32_0 : i32
    scf.if %2 {
      %c0_24 = arith.constant 0 : index
      %c0_25 = arith.constant 0 : index
      %52 = vector.load %arg3[%c0_24, %c0_25] : memref<16x32xbf16, #tpu.memory_space<vmem>>, vector<16x32xbf16>
      %53 = arith.extf %52 : vector<16x32xbf16> to vector<16x32xf32>
      %cst_26 = arith.constant dense<0.000000e+00> : vector<16xf32>
      %54 = vector.multi_reduction <add>, %53, %cst_26 [1] : vector<16x32xf32> to vector<16xf32>
      %55 = vector.shape_cast %54 : vector<16xf32> to vector<16x1xf32>
      %cst_27 = arith.constant 3.200000e+01 : f32
      %56 = vector.broadcast %cst_27 : f32 to vector<16x1xf32>
      %57 = arith.divf %55, %56 : vector<16x1xf32>
      %58 = vector.broadcast %57 : vector<16x1xf32> to vector<16x32xf32>
      %59 = arith.subf %53, %58 : vector<16x32xf32>
      %60 = arith.mulf %59, %59 : vector<16x32xf32>
      %cst_28 = arith.constant dense<0.000000e+00> : vector<16xf32>
      %61 = vector.multi_reduction <add>, %60, %cst_28 [1] : vector<16x32xf32> to vector<16xf32>
      %62 = vector.shape_cast %61 : vector<16xf32> to vector<16x1xf32>
      %cst_29 = arith.constant 3.200000e+01 : f32
      %63 = vector.broadcast %cst_29 : f32 to vector<16x1xf32>
      %64 = arith.divf %62, %63 : vector<16x1xf32>
      %65 = vector.broadcast %57 : vector<16x1xf32> to vector<16x32xf32>
      %66 = arith.subf %53, %65 : vector<16x32xf32>
      %cst_30 = arith.constant 9.99999974E-6 : f32
      %67 = vector.broadcast %cst_30 : f32 to vector<16x1xf32>
      %68 = arith.addf %64, %67 : vector<16x1xf32>
      %69 = math.rsqrt %68 : vector<16x1xf32>
      %70 = vector.broadcast %69 : vector<16x1xf32> to vector<16x32xf32>
      %71 = arith.mulf %66, %70 : vector<16x32xf32>
      %c0_31 = arith.constant 0 : index
      %c0_32 = arith.constant 0 : index
      %72 = vector.load %arg5[%c0_31, %c0_32] : memref<1x32xf32, #tpu.memory_space<vmem>>, vector<1x32xf32>
      %73 = vector.broadcast %72 : vector<1x32xf32> to vector<16x32xf32>
      %74 = arith.mulf %71, %73 : vector<16x32xf32>
      %c0_33 = arith.constant 0 : index
      %c0_34 = arith.constant 0 : index
      %75 = vector.load %arg6[%c0_33, %c0_34] : memref<1x32xf32, #tpu.memory_space<vmem>>, vector<1x32xf32>
      %76 = vector.broadcast %75 : vector<1x32xf32> to vector<16x32xf32>
      %77 = arith.addf %74, %76 : vector<16x32xf32>
      %78 = arith.truncf %77 : vector<16x32xf32> to vector<16x32xbf16>
      %c0_35 = arith.constant 0 : index
      %c0_36 = arith.constant 0 : index
      %79 = vector.load %arg9[%c0_35, %c0_36] : memref<16x32xbf16, #tpu.memory_space<vmem>>, vector<16x32xbf16>
      tpu.vector_store %arg9[%c0_35, %c0_36], %78 {strides = array<i32>} : memref<16x32xbf16, #tpu.memory_space<vmem>>, vector<16x32xbf16>,
    } else {
    }
    %c0 = arith.constant 0 : index
    %c0_1 = arith.constant 0 : index
    %3 = vector.load %arg9[%c0, %c0_1] : memref<16x32xbf16, #tpu.memory_space<vmem>>, vector<16x32xbf16>
    %c0_2 = arith.constant 0 : index
    %c0_3 = arith.constant 0 : index
    %4 = vector.load %arg4[%c0_2, %c0_3] : memref<32x128xbf16, #tpu.memory_space<vmem>>, vector<32x128xbf16>
    %cst = arith.constant dense<0.000000e+00> : vector<16x128xf32>
    %5 = tpu.matmul %3, %4, %cst {dimension_numbers = #tpu.dot_dimension_numbers<[1], [0], [0], [1], [0, 0, 1, 1], [], []>} : vector<16x32xbf16>, vector<32x128xbf16>, vector<16x128xf32> -> vector<16x128xf32>
    %c0_4 = arith.constant 0 : index
    %c0_5 = arith.constant 0 : index
    %6 = vector.load %arg7[%c0_4, %c0_5] : memref<1x128xf32, #tpu.memory_space<vmem>>, vector<1x128xf32>
    %7 = vector.broadcast %6 : vector<1x128xf32> to vector<16x128xf32>
    %8 = arith.addf %5, %7 : vector<16x128xf32>
    %cst_6 = arith.constant 5.000000e-01 : f32
    %9 = vector.broadcast %cst_6 : f32 to vector<16x128xf32>
    %10 = arith.mulf %9, %8 : vector<16x128xf32>
    %cst_7 = arith.constant 0.707106769 : f32
    %11 = vector.broadcast %cst_7 : f32 to vector<16x128xf32>
    %12 = arith.mulf %8, %11 : vector<16x128xf32>
    %cst_8 = arith.constant 0.000000e+00 : f32
    %13 = vector.broadcast %cst_8 : f32 to vector<16x128xf32>
    %14 = arith.cmpf oge, %12, %13 : vector<16x128xf32>
    %cst_9 = arith.constant 1.000000e+00 : f32
    %cst_10 = arith.constant -1.000000e+00 : f32
    %15 = vector.broadcast %cst_9 : f32 to vector<16x128xf32>
    %16 = vector.broadcast %cst_10 : f32 to vector<16x128xf32>
    %17 = arith.select %14, %15, %16 : vector<16x128xi1>, vector<16x128xf32>
    %18 = math.absf %12 : vector<16x128xf32>
    %cst_11 = arith.constant 0.327591091 : f32
    %19 = vector.broadcast %cst_11 : f32 to vector<16x128xf32>
    %20 = arith.mulf %19, %18 : vector<16x128xf32>
    %cst_12 = arith.constant 1.000000e+00 : f32
    %21 = vector.broadcast %cst_12 : f32 to vector<16x128xf32>
    %22 = arith.addf %21, %20 : vector<16x128xf32>
    %cst_13 = arith.constant 1.000000e+00 : f32
    %23 = vector.broadcast %cst_13 : f32 to vector<16x128xf32>
    %24 = arith.divf %23, %22 : vector<16x128xf32>
    %cst_14 = arith.constant 1.06140542 : f32
    %25 = vector.broadcast %cst_14 : f32 to vector<16x128xf32>
    %26 = arith.mulf %25, %24 : vector<16x128xf32>
    %cst_15 = arith.constant -1.45315206 : f32
    %27 = vector.broadcast %cst_15 : f32 to vector<16x128xf32>
    %28 = arith.addf %26, %27 : vector<16x128xf32>
    %29 = arith.mulf %28, %24 : vector<16x128xf32>
    %cst_16 = arith.constant 1.42141378 : f32
    %30 = vector.broadcast %cst_16 : f32 to vector<16x128xf32>
    %31 = arith.addf %29, %30 : vector<16x128xf32>
    %32 = arith.mulf %31, %24 : vector<16x128xf32>
    %cst_17 = arith.constant -0.284496725 : f32
    %33 = vector.broadcast %cst_17 : f32 to vector<16x128xf32>
    %34 = arith.addf %32, %33 : vector<16x128xf32>
    %35 = arith.mulf %34, %24 : vector<16x128xf32>
    %cst_18 = arith.constant 0.254829586 : f32
    %36 = vector.broadcast %cst_18 : f32 to vector<16x128xf32>
    %37 = arith.addf %35, %36 : vector<16x128xf32>
    %38 = arith.mulf %37, %24 : vector<16x128xf32>
    %cst_19 = arith.constant 0.000000e+00 : f32
    %39 = vector.broadcast %cst_19 : f32 to vector<16x128xf32>
    %40 = arith.subf %39, %18 : vector<16x128xf32>
    %41 = arith.mulf %40, %18 : vector<16x128xf32>
    %42 = math.exp %41 : vector<16x128xf32>
    %43 = arith.mulf %38, %42 : vector<16x128xf32>
    %cst_20 = arith.constant 1.000000e+00 : f32
    %44 = vector.broadcast %cst_20 : f32 to vector<16x128xf32>
    %45 = arith.subf %44, %43 : vector<16x128xf32>
    %46 = arith.mulf %17, %45 : vector<16x128xf32>
    %cst_21 = arith.constant 1.000000e+00 : f32
    %47 = vector.broadcast %cst_21 : f32 to vector<16x128xf32>
    %48 = arith.addf %47, %46 : vector<16x128xf32>
    %49 = arith.mulf %10, %48 : vector<16x128xf32>
    %50 = arith.truncf %49 : vector<16x128xf32> to vector<16x128xbf16>
    %c0_22 = arith.constant 0 : index
    %c0_23 = arith.constant 0 : index
    %51 = vector.load %arg8[%c0_22, %c0_23] : memref<16x128xbf16, #tpu.memory_space<vmem>>, vector<16x128xbf16>
    tpu.vector_store %arg8[%c0_22, %c0_23], %50 {strides = array<i32>} : memref<16x128xbf16, #tpu.memory_space<vmem>>, vector<16x128xbf16>,
    return
  }
  func.func @transform_0(%arg0: i32, %arg1: i32, %arg2: i32) -> (i32, i32) {
    %c0_i32 = arith.constant 0 : i32
    return %arg0, %arg2 : i32, i32
  }
  func.func @transform_1(%arg0: i32, %arg1: i32, %arg2: i32) -> (i32, i32) {
    %c0_i32 = arith.constant 0 : i32
    return %arg2, %arg1 : i32, i32
  }
  func.func @transform_2(%arg0: i32, %arg1: i32, %arg2: i32) -> (i32, i32) {
    %c0_i32 = arith.constant 0 : i32
    %c0_i32_0 = arith.constant 0 : i32
    %c0_i32_1 = arith.constant 0 : i32
    return %c0_i32, %c0_i32_0 : i32, i32
  }
  func.func @transform_3(%arg0: i32, %arg1: i32, %arg2: i32) -> (i32, i32) {
    %c0_i32 = arith.constant 0 : i32
    %c0_i32_0 = arith.constant 0 : i32
    %c0_i32_1 = arith.constant 0 : i32
    return %c0_i32, %c0_i32_0 : i32, i32
  }
  func.func @transform_4(%arg0: i32, %arg1: i32, %arg2: i32) -> (i32, i32) {
    %c0_i32 = arith.constant 0 : i32
    %c0_i32_0 = arith.constant 0 : i32
    return %c0_i32, %arg1 : i32, i32
  }
  func.func @transform_5(%arg0: i32, %arg1: i32, %arg2: i32) -> (i32, i32) {
    %c0_i32 = arith.constant 0 : i32
    return %arg0, %arg1 : i32, i32
  }
}

module attributes {stable_mosaic.version = 11 : i64} {
  func.func @_matmul_kernel(%arg0: i32, %arg1: i32, %arg2: i32, %arg3: memref<16x128xbf16, #tpu.memory_space<vmem>>, %arg4: memref<128x32xbf16, #tpu.memory_space<vmem>>, %arg5: memref<1x32xf32, #tpu.memory_space<vmem>>, %arg6: memref<16x32xbf16, #tpu.memory_space<vmem>>, %arg7: memref<16x32xbf16, #tpu.memory_space<vmem>>) attributes {dimension_semantics = [#tpu.dimension_semantics<parallel>, #tpu.dimension_semantics<parallel>, #tpu.dimension_semantics<arbitrary>], iteration_bounds = array<i64: 1, 1, 1>, scalar_prefetch = 0 : i64, scratch_operands = 0 : i64, tpu.core_type = #tpu.core_type<tc>, window_params = [{transform_indices = @transform_0, window_bounds = array<i64: 16, 128>}, {transform_indices = @transform_1, window_bounds = array<i64: 128, 32>}, {transform_indices = @transform_2, window_bounds = array<i64: 1, 32>}, {transform_indices = @transform_3, window_bounds = array<i64: 16, 32>}, {transform_indices = @transform_4, window_bounds = array<i64: 16, 32>}]} {
    %c0 = arith.constant 0 : index
    %c0_0 = arith.constant 0 : index
    %0 = vector.load %arg3[%c0, %c0_0] : memref<16x128xbf16, #tpu.memory_space<vmem>>, vector<16x128xbf16>
    %c0_1 = arith.constant 0 : index
    %c0_2 = arith.constant 0 : index
    %1 = vector.load %arg4[%c0_1, %c0_2] : memref<128x32xbf16, #tpu.memory_space<vmem>>, vector<128x32xbf16>
    %cst = arith.constant dense<0.000000e+00> : vector<16x32xf32>
    %2 = tpu.matmul %0, %1, %cst {dimension_numbers = #tpu.dot_dimension_numbers<[1], [0], [0], [1], [0, 0, 1, 1], [], []>} : vector<16x128xbf16>, vector<128x32xbf16>, vector<16x32xf32> -> vector<16x32xf32>
    %c0_3 = arith.constant 0 : index
    %c0_4 = arith.constant 0 : index
    %3 = vector.load %arg5[%c0_3, %c0_4] : memref<1x32xf32, #tpu.memory_space<vmem>>, vector<1x32xf32>
    %4 = vector.broadcast %3 : vector<1x32xf32> to vector<16x32xf32>
    %5 = arith.addf %2, %4 : vector<16x32xf32>
    %c0_5 = arith.constant 0 : index
    %c0_6 = arith.constant 0 : index
    %6 = vector.load %arg6[%c0_5, %c0_6] : memref<16x32xbf16, #tpu.memory_space<vmem>>, vector<16x32xbf16>
    %7 = arith.extf %6 : vector<16x32xbf16> to vector<16x32xf32>
    %8 = arith.addf %5, %7 : vector<16x32xf32>
    %9 = arith.truncf %8 : vector<16x32xf32> to vector<16x32xbf16>
    %c0_7 = arith.constant 0 : index
    %c0_8 = arith.constant 0 : index
    %10 = vector.load %arg7[%c0_7, %c0_8] : memref<16x32xbf16, #tpu.memory_space<vmem>>, vector<16x32xbf16>
    tpu.vector_store %arg7[%c0_7, %c0_8], %9 {strides = array<i32>} : memref<16x32xbf16, #tpu.memory_space<vmem>>, vector<16x32xbf16>,
    return
  }
  func.func @transform_0(%arg0: i32, %arg1: i32, %arg2: i32) -> (i32, i32) {
    %c0_i32 = arith.constant 0 : i32
    return %arg0, %arg2 : i32, i32
  }
  func.func @transform_1(%arg0: i32, %arg1: i32, %arg2: i32) -> (i32, i32) {
    %c0_i32 = arith.constant 0 : i32
    return %arg2, %arg1 : i32, i32
  }
  func.func @transform_2(%arg0: i32, %arg1: i32, %arg2: i32) -> (i32, i32) {
    %c0_i32 = arith.constant 0 : i32
    %c0_i32_0 = arith.constant 0 : i32
    return %c0_i32, %arg1 : i32, i32
  }
  func.func @transform_3(%arg0: i32, %arg1: i32, %arg2: i32) -> (i32, i32) {
    %c0_i32 = arith.constant 0 : i32
    return %arg0, %arg1 : i32, i32
  }
  func.func @transform_4(%arg0: i32, %arg1: i32, %arg2: i32) -> (i32, i32) {
    %c0_i32 = arith.constant 0 : i32
    return %arg0, %arg1 : i32, i32
  }
}

module attributes {stable_mosaic.version = 11 : i64} {
  func.func @_matmul_kernel(%arg0: i32, %arg1: i32, %arg2: i32, %arg3: memref<16x32xbf16, #tpu.memory_space<vmem>>, %arg4: memref<32x32xbf16, #tpu.memory_space<vmem>>, %arg5: memref<1x32xf32, #tpu.memory_space<vmem>>, %arg6: memref<1x32xf32, #tpu.memory_space<vmem>>, %arg7: memref<16x32xbf16, #tpu.memory_space<vmem>>, %arg8: memref<16x32xbf16, #tpu.memory_space<vmem>>) attributes {dimension_semantics = [#tpu.dimension_semantics<parallel>, #tpu.dimension_semantics<arbitrary>, #tpu.dimension_semantics<arbitrary>], iteration_bounds = array<i64: 1, 1, 1>, scalar_prefetch = 0 : i64, scratch_operands = 1 : i64, tpu.core_type = #tpu.core_type<tc>, window_params = [{transform_indices = @transform_0, window_bounds = array<i64: 16, 32>}, {transform_indices = @transform_1, window_bounds = array<i64: 32, 32>}, {pipeline_mode = #tpu.pipeline_mode<synchronous>, transform_indices = @transform_2, window_bounds = array<i64: 1, 32>}, {pipeline_mode = #tpu.pipeline_mode<synchronous>, transform_indices = @transform_3, window_bounds = array<i64: 1, 32>}, {transform_indices = @transform_4, window_bounds = array<i64: 16, 32>}]} {
    %c0_i32 = arith.constant 0 : i32
    %0 = arith.cmpi eq, %arg1, %c0_i32 : i32
    %1 = arith.extui %0 : i1 to i32
    %c0_i32_0 = arith.constant 0 : i32
    %2 = arith.cmpi ne, %1, %c0_i32_0 : i32
    scf.if %2 {
      %c0_6 = arith.constant 0 : index
      %c0_7 = arith.constant 0 : index
      %8 = vector.load %arg3[%c0_6, %c0_7] : memref<16x32xbf16, #tpu.memory_space<vmem>>, vector<16x32xbf16>
      %9 = arith.extf %8 : vector<16x32xbf16> to vector<16x32xf32>
      %cst_8 = arith.constant dense<0.000000e+00> : vector<16xf32>
      %10 = vector.multi_reduction <add>, %9, %cst_8 [1] : vector<16x32xf32> to vector<16xf32>
      %11 = vector.shape_cast %10 : vector<16xf32> to vector<16x1xf32>
      %cst_9 = arith.constant 3.200000e+01 : f32
      %12 = vector.broadcast %cst_9 : f32 to vector<16x1xf32>
      %13 = arith.divf %11, %12 : vector<16x1xf32>
      %14 = vector.broadcast %13 : vector<16x1xf32> to vector<16x32xf32>
      %15 = arith.subf %9, %14 : vector<16x32xf32>
      %16 = arith.mulf %15, %15 : vector<16x32xf32>
      %cst_10 = arith.constant dense<0.000000e+00> : vector<16xf32>
      %17 = vector.multi_reduction <add>, %16, %cst_10 [1] : vector<16x32xf32> to vector<16xf32>
      %18 = vector.shape_cast %17 : vector<16xf32> to vector<16x1xf32>
      %cst_11 = arith.constant 3.200000e+01 : f32
      %19 = vector.broadcast %cst_11 : f32 to vector<16x1xf32>
      %20 = arith.divf %18, %19 : vector<16x1xf32>
      %21 = vector.broadcast %13 : vector<16x1xf32> to vector<16x32xf32>
      %22 = arith.subf %9, %21 : vector<16x32xf32>
      %cst_12 = arith.constant 9.99999974E-6 : f32
      %23 = vector.broadcast %cst_12 : f32 to vector<16x1xf32>
      %24 = arith.addf %20, %23 : vector<16x1xf32>
      %25 = math.rsqrt %24 : vector<16x1xf32>
      %26 = vector.broadcast %25 : vector<16x1xf32> to vector<16x32xf32>
      %27 = arith.mulf %22, %26 : vector<16x32xf32>
      %c0_13 = arith.constant 0 : index
      %c0_14 = arith.constant 0 : index
      %28 = vector.load %arg5[%c0_13, %c0_14] : memref<1x32xf32, #tpu.memory_space<vmem>>, vector<1x32xf32>
      %29 = vector.broadcast %28 : vector<1x32xf32> to vector<16x32xf32>
      %30 = arith.mulf %27, %29 : vector<16x32xf32>
      %c0_15 = arith.constant 0 : index
      %c0_16 = arith.constant 0 : index
      %31 = vector.load %arg6[%c0_15, %c0_16] : memref<1x32xf32, #tpu.memory_space<vmem>>, vector<1x32xf32>
      %32 = vector.broadcast %31 : vector<1x32xf32> to vector<16x32xf32>
      %33 = arith.addf %30, %32 : vector<16x32xf32>
      %34 = arith.truncf %33 : vector<16x32xf32> to vector<16x32xbf16>
      %c0_17 = arith.constant 0 : index
      %c0_18 = arith.constant 0 : index
      %35 = vector.load %arg8[%c0_17, %c0_18] : memref<16x32xbf16, #tpu.memory_space<vmem>>, vector<16x32xbf16>
      tpu.vector_store %arg8[%c0_17, %c0_18], %34 {strides = array<i32>} : memref<16x32xbf16, #tpu.memory_space<vmem>>, vector<16x32xbf16>,
    } else {
    }
    %c0 = arith.constant 0 : index
    %c0_1 = arith.constant 0 : index
    %3 = vector.load %arg8[%c0, %c0_1] : memref<16x32xbf16, #tpu.memory_space<vmem>>, vector<16x32xbf16>
    %c0_2 = arith.constant 0 : index
    %c0_3 = arith.constant 0 : index
    %4 = vector.load %arg4[%c0_2, %c0_3] : memref<32x32xbf16, #tpu.memory_space<vmem>>, vector<32x32xbf16>
    %cst = arith.constant dense<0.000000e+00> : vector<16x32xf32>
    %5 = tpu.matmul %3, %4, %cst {dimension_numbers = #tpu.dot_dimension_numbers<[1], [0], [0], [1], [0, 0, 1, 1], [], []>} : vector<16x32xbf16>, vector<32x32xbf16>, vector<16x32xf32> -> vector<16x32xf32>
    %6 = arith.truncf %5 : vector<16x32xf32> to vector<16x32xbf16>
    %c0_4 = arith.constant 0 : index
    %c0_5 = arith.constant 0 : index
    %7 = vector.load %arg7[%c0_4, %c0_5] : memref<16x32xbf16, #tpu.memory_space<vmem>>, vector<16x32xbf16>
    tpu.vector_store %arg7[%c0_4, %c0_5], %6 {strides = array<i32>} : memref<16x32xbf16, #tpu.memory_space<vmem>>, vector<16x32xbf16>,
    return
  }
  func.func @transform_0(%arg0: i32, %arg1: i32, %arg2: i32) -> (i32, i32) {
    %c0_i32 = arith.constant 0 : i32
    return %arg0, %arg2 : i32, i32
  }
  func.func @transform_1(%arg0: i32, %arg1: i32, %arg2: i32) -> (i32, i32) {
    %c0_i32 = arith.constant 0 : i32
    return %arg2, %arg1 : i32, i32
  }
  func.func @transform_2(%arg0: i32, %arg1: i32, %arg2: i32) -> (i32, i32) {
    %c0_i32 = arith.constant 0 : i32
    %c0_i32_0 = arith.constant 0 : i32
    %c0_i32_1 = arith.constant 0 : i32
    return %c0_i32, %c0_i32_0 : i32, i32
  }
  func.func @transform_3(%arg0: i32, %arg1: i32, %arg2: i32) -> (i32, i32) {
    %c0_i32 = arith.constant 0 : i32
    %c0_i32_0 = arith.constant 0 : i32
    %c0_i32_1 = arith.constant 0 : i32
    return %c0_i32, %c0_i32_0 : i32, i32
  }
  func.func @transform_4(%arg0: i32, %arg1: i32, %arg2: i32) -> (i32, i32) {
    %c0_i32 = arith.constant 0 : i32
    return %arg0, %arg1 : i32, i32
  }
}

module attributes {stable_mosaic.version = 11 : i64} {
  func.func @_attn_kernel(%arg0: i32, %arg1: memref<1x8x96xbf16, #tpu.memory_space<vmem>>, %arg2: memref<1x8x32xbf16, #tpu.memory_space<vmem>>) attributes {dimension_semantics = [#tpu.dimension_semantics<parallel>], iteration_bounds = array<i64: 2>, scalar_prefetch = 0 : i64, scratch_operands = 0 : i64, tpu.core_type = #tpu.core_type<tc>, window_params = [{transform_indices = @transform_0, window_bounds = array<i64: 1, 8, 96>}, {transform_indices = @transform_1, window_bounds = array<i64: 1, 8, 32>}]} {
    %c0 = arith.constant 0 : index
    %c0_0 = arith.constant 0 : index
    %c0_1 = arith.constant 0 : index
    %0 = vector.load %arg1[%c0, %c0_0, %c0_1] : memref<1x8x96xbf16, #tpu.memory_space<vmem>>, vector<1x8x8xbf16>
    %1 = vector.shape_cast %0 : vector<1x8x8xbf16> to vector<8x8xbf16>
    %c0_2 = arith.constant 0 : index
    %c0_3 = arith.constant 0 : index
    %c32 = arith.constant 32 : index
    %2 = vector.load %arg1[%c0_2, %c0_3, %c32] : memref<1x8x96xbf16, #tpu.memory_space<vmem>>, vector<1x8x8xbf16>
    %3 = vector.shape_cast %2 : vector<1x8x8xbf16> to vector<8x8xbf16>
    %c0_4 = arith.constant 0 : index
    %c0_5 = arith.constant 0 : index
    %c64 = arith.constant 64 : index
    %4 = vector.load %arg1[%c0_4, %c0_5, %c64] : memref<1x8x96xbf16, #tpu.memory_space<vmem>>, vector<1x8x8xbf16>
    %5 = vector.shape_cast %4 : vector<1x8x8xbf16> to vector<8x8xbf16>
    %cst = arith.constant dense<0.000000e+00> : vector<8x8xf32>
    %6 = tpu.matmul %1, %3, %cst {dimension_numbers = #tpu.dot_dimension_numbers<[1], [1], [0], [0], [0, 0, 1, 0], [], []>} : vector<8x8xbf16>, vector<8x8xbf16>, vector<8x8xf32> -> vector<8x8xf32>
    %cst_6 = arith.constant dense<0xFF800000> : vector<8xf32>
    %7 = vector.multi_reduction <maximumf>, %6, %cst_6 [1] : vector<8x8xf32> to vector<8xf32>
    %8 = vector.shape_cast %7 : vector<8xf32> to vector<8x1xf32>
    %9 = vector.broadcast %8 : vector<8x1xf32> to vector<8x8xf32>
    %10 = arith.subf %6, %9 : vector<8x8xf32>
    %11 = math.exp %10 : vector<8x8xf32>
    %cst_7 = arith.constant dense<0.000000e+00> : vector<8xf32>
    %12 = vector.multi_reduction <add>, %11, %cst_7 [1] : vector<8x8xf32> to vector<8xf32>
    %13 = vector.shape_cast %12 : vector<8xf32> to vector<8x1xf32>
    %14 = arith.truncf %11 : vector<8x8xf32> to vector<8x8xbf16>
    %cst_8 = arith.constant dense<0.000000e+00> : vector<8x8xf32>
    %15 = tpu.matmul %14, %5, %cst_8 {dimension_numbers = #tpu.dot_dimension_numbers<[1], [0], [0], [1], [0, 0, 1, 1], [], []>} : vector<8x8xbf16>, vector<8x8xbf16>, vector<8x8xf32> -> vector<8x8xf32>
    %16 = tpu.reciprocal %13 {approx = true} : vector<8x1xf32> -> vector<8x1xf32>
    %17 = vector.broadcast %16 : vector<8x1xf32> to vector<8x8xf32>
    %18 = arith.mulf %15, %17 : vector<8x8xf32>
    %19 = arith.truncf %18 : vector<8x8xf32> to vector<8x8xbf16>
    %c0_9 = arith.constant 0 : index
    %c0_10 = arith.constant 0 : index
    %c0_11 = arith.constant 0 : index
    %20 = vector.load %arg2[%c0_9, %c0_10, %c0_11] : memref<1x8x32xbf16, #tpu.memory_space<vmem>>, vector<1x8x8xbf16>
    %21 = vector.shape_cast %20 : vector<1x8x8xbf16> to vector<8x8xbf16>
    %22 = vector.shape_cast %19 : vector<8x8xbf16> to vector<1x8x8xbf16>
    tpu.vector_store %arg2[%c0_9, %c0_10, %c0_11], %22 {strides = array<i32>} : memref<1x8x32xbf16, #tpu.memory_space<vmem>>, vector<1x8x8xbf16>,
    %c0_12 = arith.constant 0 : index
    %c0_13 = arith.constant 0 : index
    %c8 = arith.constant 8 : index
    %23 = vector.load %arg1[%c0_12, %c0_13, %c8] : memref<1x8x96xbf16, #tpu.memory_space<vmem>>, vector<1x8x8xbf16>
    %24 = vector.shape_cast %23 : vector<1x8x8xbf16> to vector<8x8xbf16>
    %c0_14 = arith.constant 0 : index
    %c0_15 = arith.constant 0 : index
    %c40 = arith.constant 40 : index
    %25 = vector.load %arg1[%c0_14, %c0_15, %c40] : memref<1x8x96xbf16, #tpu.memory_space<vmem>>, vector<1x8x8xbf16>
    %26 = vector.shape_cast %25 : vector<1x8x8xbf16> to vector<8x8xbf16>
    %c0_16 = arith.constant 0 : index
    %c0_17 = arith.constant 0 : index
    %c72 = arith.constant 72 : index
    %27 = vector.load %arg1[%c0_16, %c0_17, %c72] : memref<1x8x96xbf16, #tpu.memory_space<vmem>>, vector<1x8x8xbf16>
    %28 = vector.shape_cast %27 : vector<1x8x8xbf16> to vector<8x8xbf16>
    %cst_18 = arith.constant dense<0.000000e+00> : vector<8x8xf32>
    %29 = tpu.matmul %24, %26, %cst_18 {dimension_numbers = #tpu.dot_dimension_numbers<[1], [1], [0], [0], [0, 0, 1, 0], [], []>} : vector<8x8xbf16>, vector<8x8xbf16>, vector<8x8xf32> -> vector<8x8xf32>
    %cst_19 = arith.constant dense<0xFF800000> : vector<8xf32>
    %30 = vector.multi_reduction <maximumf>, %29, %cst_19 [1] : vector<8x8xf32> to vector<8xf32>
    %31 = vector.shape_cast %30 : vector<8xf32> to vector<8x1xf32>
    %32 = vector.broadcast %31 : vector<8x1xf32> to vector<8x8xf32>
    %33 = arith.subf %29, %32 : vector<8x8xf32>
    %34 = math.exp %33 : vector<8x8xf32>
    %cst_20 = arith.constant dense<0.000000e+00> : vector<8xf32>
    %35 = vector.multi_reduction <add>, %34, %cst_20 [1] : vector<8x8xf32> to vector<8xf32>
    %36 = vector.shape_cast %35 : vector<8xf32> to vector<8x1xf32>
    %37 = arith.truncf %34 : vector<8x8xf32> to vector<8x8xbf16>
    %cst_21 = arith.constant dense<0.000000e+00> : vector<8x8xf32>
    %38 = tpu.matmul %37, %28, %cst_21 {dimension_numbers = #tpu.dot_dimension_numbers<[1], [0], [0], [1], [0, 0, 1, 1], [], []>} : vector<8x8xbf16>, vector<8x8xbf16>, vector<8x8xf32> -> vector<8x8xf32>
    %39 = tpu.reciprocal %36 {approx = true} : vector<8x1xf32> -> vector<8x1xf32>
    %40 = vector.broadcast %39 : vector<8x1xf32> to vector<8x8xf32>
    %41 = arith.mulf %38, %40 : vector<8x8xf32>
    %42 = arith.truncf %41 : vector<8x8xf32> to vector<8x8xbf16>
    %c0_22 = arith.constant 0 : index
    %c0_23 = arith.constant 0 : index
    %c8_24 = arith.constant 8 : index
    %43 = vector.load %arg2[%c0_22, %c0_23, %c8_24] : memref<1x8x32xbf16, #tpu.memory_space<vmem>>, vector<1x8x8xbf16>
    %44 = vector.shape_cast %43 : vector<1x8x8xbf16> to vector<8x8xbf16>
    %45 = vector.shape_cast %42 : vector<8x8xbf16> to vector<1x8x8xbf16>
    tpu.vector_store %arg2[%c0_22, %c0_23, %c8_24], %45 {strides = array<i32>} : memref<1x8x32xbf16, #tpu.memory_space<vmem>>, vector<1x8x8xbf16>,
    %c0_25 = arith.constant 0 : index
    %c0_26 = arith.constant 0 : index
    %c16 = arith.constant 16 : index
    %46 = vector.load %arg1[%c0_25, %c0_26, %c16] : memref<1x8x96xbf16, #tpu.memory_space<vmem>>, vector<1x8x8xbf16>
    %47 = vector.shape_cast %46 : vector<1x8x8xbf16> to vector<8x8xbf16>
    %c0_27 = arith.constant 0 : index
    %c0_28 = arith.constant 0 : index
    %c48 = arith.constant 48 : index
    %48 = vector.load %arg1[%c0_27, %c0_28, %c48] : memref<1x8x96xbf16, #tpu.memory_space<vmem>>, vector<1x8x8xbf16>
    %49 = vector.shape_cast %48 : vector<1x8x8xbf16> to vector<8x8xbf16>
    %c0_29 = arith.constant 0 : index
    %c0_30 = arith.constant 0 : index
    %c80 = arith.constant 80 : index
    %50 = vector.load %arg1[%c0_29, %c0_30, %c80] : memref<1x8x96xbf16, #tpu.memory_space<vmem>>, vector<1x8x8xbf16>
    %51 = vector.shape_cast %50 : vector<1x8x8xbf16> to vector<8x8xbf16>
    %cst_31 = arith.constant dense<0.000000e+00> : vector<8x8xf32>
    %52 = tpu.matmul %47, %49, %cst_31 {dimension_numbers = #tpu.dot_dimension_numbers<[1], [1], [0], [0], [0, 0, 1, 0], [], []>} : vector<8x8xbf16>, vector<8x8xbf16>, vector<8x8xf32> -> vector<8x8xf32>
    %cst_32 = arith.constant dense<0xFF800000> : vector<8xf32>
    %53 = vector.multi_reduction <maximumf>, %52, %cst_32 [1] : vector<8x8xf32> to vector<8xf32>
    %54 = vector.shape_cast %53 : vector<8xf32> to vector<8x1xf32>
    %55 = vector.broadcast %54 : vector<8x1xf32> to vector<8x8xf32>
    %56 = arith.subf %52, %55 : vector<8x8xf32>
    %57 = math.exp %56 : vector<8x8xf32>
    %cst_33 = arith.constant dense<0.000000e+00> : vector<8xf32>
    %58 = vector.multi_reduction <add>, %57, %cst_33 [1] : vector<8x8xf32> to vector<8xf32>
    %59 = vector.shape_cast %58 : vector<8xf32> to vector<8x1xf32>
    %60 = arith.truncf %57 : vector<8x8xf32> to vector<8x8xbf16>
    %cst_34 = arith.constant dense<0.000000e+00> : vector<8x8xf32>
    %61 = tpu.matmul %60, %51, %cst_34 {dimension_numbers = #tpu.dot_dimension_numbers<[1], [0], [0], [1], [0, 0, 1, 1], [], []>} : vector<8x8xbf16>, vector<8x8xbf16>, vector<8x8xf32> -> vector<8x8xf32>
    %62 = tpu.reciprocal %59 {approx = true} : vector<8x1xf32> -> vector<8x1xf32>
    %63 = vector.broadcast %62 : vector<8x1xf32> to vector<8x8xf32>
    %64 = arith.mulf %61, %63 : vector<8x8xf32>
    %65 = arith.truncf %64 : vector<8x8xf32> to vector<8x8xbf16>
    %c0_35 = arith.constant 0 : index
    %c0_36 = arith.constant 0 : index
    %c16_37 = arith.constant 16 : index
    %66 = vector.load %arg2[%c0_35, %c0_36, %c16_37] : memref<1x8x32xbf16, #tpu.memory_space<vmem>>, vector<1x8x8xbf16>
    %67 = vector.shape_cast %66 : vector<1x8x8xbf16> to vector<8x8xbf16>
    %68 = vector.shape_cast %65 : vector<8x8xbf16> to vector<1x8x8xbf16>
    tpu.vector_store %arg2[%c0_35, %c0_36, %c16_37], %68 {strides = array<i32>} : memref<1x8x32xbf16, #tpu.memory_space<vmem>>, vector<1x8x8xbf16>,
    %c0_38 = arith.constant 0 : index
    %c0_39 = arith.constant 0 : index
    %c24 = arith.constant 24 : index
    %69 = vector.load %arg1[%c0_38, %c0_39, %c24] : memref<1x8x96xbf16, #tpu.memory_space<vmem>>, vector<1x8x8xbf16>
    %70 = vector.shape_cast %69 : vector<1x8x8xbf16> to vector<8x8xbf16>
    %c0_40 = arith.constant 0 : index
    %c0_41 = arith.constant 0 : index
    %c56 = arith.constant 56 : index
    %71 = vector.load %arg1[%c0_40, %c0_41, %c56] : memref<1x8x96xbf16, #tpu.memory_space<vmem>>, vector<1x8x8xbf16>
    %72 = vector.shape_cast %71 : vector<1x8x8xbf16> to vector<8x8xbf16>
    %c0_42 = arith.constant 0 : index
    %c0_43 = arith.constant 0 : index
    %c88 = arith.constant 88 : index
    %73 = vector.load %arg1[%c0_42, %c0_43, %c88] : memref<1x8x96xbf16, #tpu.memory_space<vmem>>, vector<1x8x8xbf16>
    %74 = vector.shape_cast %73 : vector<1x8x8xbf16> to vector<8x8xbf16>
    %cst_44 = arith.constant dense<0.000000e+00> : vector<8x8xf32>
    %75 = tpu.matmul %70, %72, %cst_44 {dimension_numbers = #tpu.dot_dimension_numbers<[1], [1], [0], [0], [0, 0, 1, 0], [], []>} : vector<8x8xbf16>, vector<8x8xbf16>, vector<8x8xf32> -> vector<8x8xf32>
    %cst_45 = arith.constant dense<0xFF800000> : vector<8xf32>
    %76 = vector.multi_reduction <maximumf>, %75, %cst_45 [1] : vector<8x8xf32> to vector<8xf32>
    %77 = vector.shape_cast %76 : vector<8xf32> to vector<8x1xf32>
    %78 = vector.broadcast %77 : vector<8x1xf32> to vector<8x8xf32>
    %79 = arith.subf %75, %78 : vector<8x8xf32>
    %80 = math.exp %79 : vector<8x8xf32>
    %cst_46 = arith.constant dense<0.000000e+00> : vector<8xf32>
    %81 = vector.multi_reduction <add>, %80, %cst_46 [1] : vector<8x8xf32> to vector<8xf32>
    %82 = vector.shape_cast %81 : vector<8xf32> to vector<8x1xf32>
    %83 = arith.truncf %80 : vector<8x8xf32> to vector<8x8xbf16>
    %cst_47 = arith.constant dense<0.000000e+00> : vector<8x8xf32>
    %84 = tpu.matmul %83, %74, %cst_47 {dimension_numbers = #tpu.dot_dimension_numbers<[1], [0], [0], [1], [0, 0, 1, 1], [], []>} : vector<8x8xbf16>, vector<8x8xbf16>, vector<8x8xf32> -> vector<8x8xf32>
    %85 = tpu.reciprocal %82 {approx = true} : vector<8x1xf32> -> vector<8x1xf32>
    %86 = vector.broadcast %85 : vector<8x1xf32> to vector<8x8xf32>
    %87 = arith.mulf %84, %86 : vector<8x8xf32>
    %88 = arith.truncf %87 : vector<8x8xf32> to vector<8x8xbf16>
    %c0_48 = arith.constant 0 : index
    %c0_49 = arith.constant 0 : index
    %c24_50 = arith.constant 24 : index
    %89 = vector.load %arg2[%c0_48, %c0_49, %c24_50] : memref<1x8x32xbf16, #tpu.memory_space<vmem>>, vector<1x8x8xbf16>
    %90 = vector.shape_cast %89 : vector<1x8x8xbf16> to vector<8x8xbf16>
    %91 = vector.shape_cast %88 : vector<8x8xbf16> to vector<1x8x8xbf16>
    tpu.vector_store %arg2[%c0_48, %c0_49, %c24_50], %91 {strides = array<i32>} : memref<1x8x32xbf16, #tpu.memory_space<vmem>>, vector<1x8x8xbf16>,
    return
  }
  func.func @transform_0(%arg0: i32) -> (i32, i32, i32) {
    %c0_i32 = arith.constant 0 : i32
    %c0_i32_0 = arith.constant 0 : i32
    %c0_i32_1 = arith.constant 0 : i32
    return %arg0, %c0_i32, %c0_i32_0 : i32, i32, i32
  }
  func.func @transform_1(%arg0: i32) -> (i32, i32, i32) {
    %c0_i32 = arith.constant 0 : i32
    %c0_i32_0 = arith.constant 0 : i32
    %c0_i32_1 = arith.constant 0 : i32
    return %arg0, %c0_i32, %c0_i32_0 : i32, i32, i32
  }
}

module attributes {stable_mosaic.version = 11 : i64} {
  func.func @_matmul_kernel(%arg0: i32, %arg1: i32, %arg2: i32, %arg3: memref<16x32xbf16, #tpu.memory_space<vmem>>, %arg4: memref<32x192xbf16, #tpu.memory_space<vmem>>, %arg5: memref<1x32xf32, #tpu.memory_space<vmem>>, %arg6: memref<1x32xf32, #tpu.memory_space<vmem>>, %arg7: memref<1x192xf32, #tpu.memory_space<vmem>>, %arg8: memref<16x192xf32, #tpu.memory_space<vmem>>, %arg9: memref<16x32xbf16, #tpu.memory_space<vmem>>) attributes {dimension_semantics = [#tpu.dimension_semantics<parallel>, #tpu.dimension_semantics<arbitrary>, #tpu.dimension_semantics<arbitrary>], iteration_bounds = array<i64: 1, 1, 1>, scalar_prefetch = 0 : i64, scratch_operands = 1 : i64, tpu.core_type = #tpu.core_type<tc>, window_params = [{transform_indices = @transform_0, window_bounds = array<i64: 16, 32>}, {transform_indices = @transform_1, window_bounds = array<i64: 32, 192>}, {pipeline_mode = #tpu.pipeline_mode<synchronous>, transform_indices = @transform_2, window_bounds = array<i64: 1, 32>}, {pipeline_mode = #tpu.pipeline_mode<synchronous>, transform_indices = @transform_3, window_bounds = array<i64: 1, 32>}, {transform_indices = @transform_4, window_bounds = array<i64: 1, 192>}, {transform_indices = @transform_5, window_bounds = array<i64: 16, 192>}]} {
    %c0_i32 = arith.constant 0 : i32
    %0 = arith.cmpi eq, %arg1, %c0_i32 : i32
    %1 = arith.extui %0 : i1 to i32
    %c0_i32_0 = arith.constant 0 : i32
    %2 = arith.cmpi ne, %1, %c0_i32_0 : i32
    scf.if %2 {
      %c0_8 = arith.constant 0 : index
      %c0_9 = arith.constant 0 : index
      %10 = vector.load %arg3[%c0_8, %c0_9] : memref<16x32xbf16, #tpu.memory_space<vmem>>, vector<16x32xbf16>
      %11 = arith.extf %10 : vector<16x32xbf16> to vector<16x32xf32>
      %cst_10 = arith.constant dense<0.000000e+00> : vector<16xf32>
      %12 = vector.multi_reduction <add>, %11, %cst_10 [1] : vector<16x32xf32> to vector<16xf32>
      %13 = vector.shape_cast %12 : vector<16xf32> to vector<16x1xf32>
      %cst_11 = arith.constant 3.200000e+01 : f32
      %14 = vector.broadcast %cst_11 : f32 to vector<16x1xf32>
      %15 = arith.divf %13, %14 : vector<16x1xf32>
      %16 = vector.broadcast %15 : vector<16x1xf32> to vector<16x32xf32>
      %17 = arith.subf %11, %16 : vector<16x32xf32>
      %18 = arith.mulf %17, %17 : vector<16x32xf32>
      %cst_12 = arith.constant dense<0.000000e+00> : vector<16xf32>
      %19 = vector.multi_reduction <add>, %18, %cst_12 [1] : vector<16x32xf32> to vector<16xf32>
      %20 = vector.shape_cast %19 : vector<16xf32> to vector<16x1xf32>
      %cst_13 = arith.constant 3.200000e+01 : f32
      %21 = vector.broadcast %cst_13 : f32 to vector<16x1xf32>
      %22 = arith.divf %20, %21 : vector<16x1xf32>
      %23 = vector.broadcast %15 : vector<16x1xf32> to vector<16x32xf32>
      %24 = arith.subf %11, %23 : vector<16x32xf32>
      %cst_14 = arith.constant 9.99999974E-6 : f32
      %25 = vector.broadcast %cst_14 : f32 to vector<16x1xf32>
      %26 = arith.addf %22, %25 : vector<16x1xf32>
      %27 = math.rsqrt %26 : vector<16x1xf32>
      %28 = vector.broadcast %27 : vector<16x1xf32> to vector<16x32xf32>
      %29 = arith.mulf %24, %28 : vector<16x32xf32>
      %c0_15 = arith.constant 0 : index
      %c0_16 = arith.constant 0 : index
      %30 = vector.load %arg5[%c0_15, %c0_16] : memref<1x32xf32, #tpu.memory_space<vmem>>, vector<1x32xf32>
      %31 = vector.broadcast %30 : vector<1x32xf32> to vector<16x32xf32>
      %32 = arith.mulf %29, %31 : vector<16x32xf32>
      %c0_17 = arith.constant 0 : index
      %c0_18 = arith.constant 0 : index
      %33 = vector.load %arg6[%c0_17, %c0_18] : memref<1x32xf32, #tpu.memory_space<vmem>>, vector<1x32xf32>
      %34 = vector.broadcast %33 : vector<1x32xf32> to vector<16x32xf32>
      %35 = arith.addf %32, %34 : vector<16x32xf32>
      %36 = arith.truncf %35 : vector<16x32xf32> to vector<16x32xbf16>
      %c0_19 = arith.constant 0 : index
      %c0_20 = arith.constant 0 : index
      %37 = vector.load %arg9[%c0_19, %c0_20] : memref<16x32xbf16, #tpu.memory_space<vmem>>, vector<16x32xbf16>
      tpu.vector_store %arg9[%c0_19, %c0_20], %36 {strides = array<i32>} : memref<16x32xbf16, #tpu.memory_space<vmem>>, vector<16x32xbf16>,
    } else {
    }
    %c0 = arith.constant 0 : index
    %c0_1 = arith.constant 0 : index
    %3 = vector.load %arg9[%c0, %c0_1] : memref<16x32xbf16, #tpu.memory_space<vmem>>, vector<16x32xbf16>
    %c0_2 = arith.constant 0 : index
    %c0_3 = arith.constant 0 : index
    %4 = vector.load %arg4[%c0_2, %c0_3] : memref<32x192xbf16, #tpu.memory_space<vmem>>, vector<32x192xbf16>
    %cst = arith.constant dense<0.000000e+00> : vector<16x192xf32>
    %5 = tpu.matmul %3, %4, %cst {dimension_numbers = #tpu.dot_dimension_numbers<[1], [0], [0], [1], [0, 0, 1, 1], [], []>} : vector<16x32xbf16>, vector<32x192xbf16>, vector<16x192xf32> -> vector<16x192xf32>
    %c0_4 = arith.constant 0 : index
    %c0_5 = arith.constant 0 : index
    %6 = vector.load %arg7[%c0_4, %c0_5] : memref<1x192xf32, #tpu.memory_space<vmem>>, vector<1x192xf32>
    %7 = vector.broadcast %6 : vector<1x192xf32> to vector<16x192xf32>
    %8 = arith.addf %5, %7 : vector<16x192xf32>
    %c0_6 = arith.constant 0 : index
    %c0_7 = arith.constant 0 : index
    %9 = vector.load %arg8[%c0_6, %c0_7] : memref<16x192xf32, #tpu.memory_space<vmem>>, vector<16x192xf32>
    tpu.vector_store %arg8[%c0_6, %c0_7], %8 {strides = array<i32>} : memref<16x192xf32, #tpu.memory_space<vmem>>, vector<16x192xf32>,
    return
  }
  func.func @transform_0(%arg0: i32, %arg1: i32, %arg2: i32) -> (i32, i32) {
    %c0_i32 = arith.constant 0 : i32
    return %arg0, %arg2 : i32, i32
  }
  func.func @transform_1(%arg0: i32, %arg1: i32, %arg2: i32) -> (i32, i32) {
    %c0_i32 = arith.constant 0 : i32
    return %arg2, %arg1 : i32, i32
  }
  func.func @transform_2(%arg0: i32, %arg1: i32, %arg2: i32) -> (i32, i32) {
    %c0_i32 = arith.constant 0 : i32
    %c0_i32_0 = arith.constant 0 : i32
    %c0_i32_1 = arith.constant 0 : i32
    return %c0_i32, %c0_i32_0 : i32, i32
  }
  func.func @transform_3(%arg0: i32, %arg1: i32, %arg2: i32) -> (i32, i32) {
    %c0_i32 = arith.constant 0 : i32
    %c0_i32_0 = arith.constant 0 : i32
    %c0_i32_1 = arith.constant 0 : i32
    return %c0_i32, %c0_i32_0 : i32, i32
  }
  func.func @transform_4(%arg0: i32, %arg1: i32, %arg2: i32) -> (i32, i32) {
    %c0_i32 = arith.constant 0 : i32
    %c0_i32_0 = arith.constant 0 : i32
    return %c0_i32, %arg1 : i32, i32
  }
  func.func @transform_5(%arg0: i32, %arg1: i32, %arg2: i32) -> (i32, i32) {
    %c0_i32 = arith.constant 0 : i32
    return %arg0, %arg1 : i32, i32
  }
}

</mosaic_0001>

<bundles_post_ra>
// kernel: model_forward.23
= control target key start
LH: loop header
LB: loop body
LE: loop exit
PB: predicated region body
PF: predicated region fallthrough
CT: control target
= control target key end

     0   :  { %vm121_vm0 = vcmask 523264   ;;  %vm155_vm1 = vcmask 257024   ;;  %s301_s1 = inlined_call_operand.vmem [shape: bf16[192,32], index: 1, kind: input, shape index: {}]   ;;  %s302_s0 = inlined_call_operand.vmem [shape: f32[16,192], index: 0, kind: input, shape index: {}]   ;;  %s303_s2 = inlined_call_operand.vmem [shape: f32[1,32], index: 2, kind: input, shape index: {}]   ;;  %s304_s3 = inlined_call_operand.vmem [shape: bf16[16,32], index: 3, kind: output, shape index: {}]  }
   0x1   :  { %v218_v0 = vld [vmem:[%s301_s1 + $0x38] sm:$0xff]  ;;  %v217_v2 = vld [vmem:[%s301_s1 + $0x30] sm:$0xff]  ;;  %v216_v4 = vld [vmem:[%s301_s1 + $0x28] sm:$0xff] }
   0x2   :  { %v222_v1 = vld [vmem:[%s301_s1 + $0x58] sm:$0xff]  ;;  %125 = vmatpush.bf16.msra.mxu0 %v218_v0  ;;  %v221_v3 = vld [vmem:[%s301_s1 + $0x50] sm:$0xff]  ;;  %v220_v5 = vld [vmem:[%s301_s1 + $0x48] sm:$0xff] }
   0x3   :  { %143 = vmatpush.bf16.msra.mxu1 %v222_v1  ;;  %v215_v6 = vld [vmem:[%s301_s1 + $0x20] sm:$0xff]  ;;  %v16_v8 = vld [vmem:[%s302_s0 + $0x8] sm:$0xff]  ;;  %v18_v9 = vld [vmem:[%s302_s0 + $0x18] sm:$0xff] }
   0x4   :  { %v219_v7 = vld [vmem:[%s301_s1 + $0x40] sm:$0xff]  ;;  %v214_v10 = vld [vmem:[%s301_s1 + $0x18] sm:$0xff]  ;;  %v20_v11 = vpack.c.bf16 %v18_v9, %v16_v8  ;;  %v213_v12 = vld [vmem:[%s301_s1 + $0x10] sm:$0xff] }
   0x5   :  { %v212_v13 = vld [vmem:[%s301_s1 + $0x8] sm:$0xff]  ;;  %v211_v14 = vld [vmem:[%s301_s1] sm:$0xff]  ;;  %v17_v16 = vld [vmem:[%s302_s0 + $0x10] sm:$0xff] }
   0x6   :  { %126 = vmatpush.bf16.msra.mxu0 %v217_v2  ;;  %v15_v15 = vld [vmem:[%s302_s0] sm:$0xff] }
   0x7   :  { %144 = vmatpush.bf16.msra.mxu1 %v221_v3  ;;  %v19_v17 = vpack.c.bf16 %v17_v16, %v15_v15  ;;  %v223_v18 = vld [vmem:[%s303_s2] ss:$0 sm:$0xff] }
   0xa   :  { %127 = vmatpush.bf16.msra.mxu0 %v216_v4 }
   0xb   :  { %145 = vmatpush.bf16.msra.mxu1 %v220_v5 }
   0xe   :  { %128 = vmatpush.bf16.msra.mxu0 %v215_v6 }
   0xf   :  { %146 = vmatpush.bf16.msra.mxu1 %v219_v7 }
  0x12   :  { %129 = vmatpush.bf16.msra.mxu0 %v214_v10  ;;  %210 = vmatmul.msk.bf16.vlgmr.msra.gmra.mxu1 %vm121_vm0, %v20_v11 }
  0x16   :  { %130 = vmatpush.bf16.msra.mxu0 %v213_v12 }
  0x1a   :  { %131 = vmatpush.bf16.msra.mxu0 %v212_v13 }
  0x1e   :  { %132 = vmatpush.bf16.msra.mxu0 %v211_v14 }
  0x21   :  { %133 = vmatmul.bf16.vlgmr.msra.gmra.mxu0 %v19_v17 }
  0x8f   :  { %v148_v19 = vpop.f32.mrf.mxu1 }
  0x97   :  { %v150_v26 = vpop.f32.mrf.mxu1 }
  0x9e   :  { %v134_v20 = vpop.f32.mrf.mxu0 }
  0x9f   :  { %v135_v21 = vadd.f32 %v223_v18, %v134_v20 }
  0xa1   :  { %v149_v22 = vadd.f32 %v148_v19, %v135_v21 }
  0xa3   :  { %v153_v23 = vpack.c.bf16 %v149_v22, %v149_v22 }
  0xa5   :  { %156 = vst.msk [vmem:[%s304_s3] sm:$0xf] %vm155_vm1, %v153_v23 }
  0xa6   :  { %v136_v24 = vpop.f32.mrf.mxu0 }
  0xa7   :  { %v137_v25 = vadd.f32 %v223_v18, %v136_v24 }
  0xa9   :  { %v151_v27 = vadd.f32 %v150_v26, %v137_v25 }
  0xab   :  { %v154_v28 = vpack.c.bf16 %v151_v27, %v151_v27 }
  0xad   :  { %157 = vst.msk [vmem:[%s304_s3 + $0x4] sm:$0xf] %vm155_vm1, %v154_v28 }

// kernel: model_forward.26
= control target key start
LH: loop header
LB: loop body
LE: loop exit
PB: predicated region body
PF: predicated region fallthrough
CT: control target
= control target key end

     0   :  { %vm45_vm0 = vcmask 261120   ;;  %vm71_vm1 = vcmask 257024   ;;  %s145_s1 = inlined_call_operand.vmem [shape: bf16[32,32], index: 1, kind: input, shape index: {}]   ;;  %s146_s2 = inlined_call_operand.vmem [shape: f32[1,32], index: 2, kind: input, shape index: {}]   ;;  %s147_s0 = inlined_call_operand.vmem [shape: bf16[16,32], index: 0, kind: input, shape index: {}]   ;;  %s148_s3 = inlined_call_operand.vmem [shape: bf16[16,32], index: 3, kind: input, shape index: {}]   ;;  %s149_s4 = inlined_call_operand.vmem [shape: bf16[16,32], index: 4, kind: output, shape index: {}]  }
   0x1   :  { %v93_v0 = vld [vmem:[%s145_s1 + $0x8] sm:$0xff]  ;;  %v92_v1 = vld [vmem:[%s145_s1] sm:$0xff] }
   0x2   :  { %55 = vmatpush.bf16.msra.mxu0 %v93_v0  ;;  %v91_v2 = vld [vmem:[%s147_s0] sm:$0xff] }
   0x3   :  { %v95_v3 = vld [vmem:[%s148_s3] sm:$0xff]  }
   0x4   :  { %v98_v4 = vld [vmem:[%s146_s2] ss:$0 sm:$0xff]  ;;  %v96_v5 = vunpack.c.l.bf16 %v95_v3  ;;  %v97_v10 = vunpack.c.h.bf16 %v95_v3 }
   0x6   :  { %56 = vmatpush.bf16.msra.mxu0 %v92_v1 }
   0x9   :  { %90 = vmatmul.msk.bf16.vlgmr.msra.gmra.mxu0 %vm45_vm0, %v91_v2 }
  0x86   :  { %v58_v6 = vpop.f32.mrf.mxu0 }
  0x87   :  { %v59_v7 = vadd.f32 %v98_v4, %v58_v6 }
  0x89   :  { %v67_v8 = vadd.f32 %v96_v5, %v59_v7 }
  0x8b   :  { %v69_v9 = vpack.c.bf16 %v67_v8, %v67_v8 }
  0x8d   :  { %72 = vst.msk [vmem:[%s149_s4] sm:$0xf] %vm71_vm1, %v69_v9 }
  0x8e   :  { %v60_v11 = vpop.f32.mrf.mxu0 }
  0x8f   :  { %v61_v12 = vadd.f32 %v98_v4, %v60_v11 }
  0x91   :  { %v68_v13 = vadd.f32 %v97_v10, %v61_v12 }
  0x93   :  { %v70_v14 = vpack.c.bf16 %v68_v13, %v68_v13 }
  0x95   :  { %73 = vst.msk [vmem:[%s149_s4 + $0x4] sm:$0xf] %vm71_vm1, %v70_v14 }

// kernel: model_forward.24
= control target key start
LH: loop header
LB: loop body
LE: loop exit
PB: predicated region body
PF: predicated region fallthrough
CT: control target
= control target key end

     0   :  { %vm26_vm0 = vcmask 261120   ;;  %v174_v5 = vmov 32.0   ;;  %vm92_vm6 = vcmask 257024   ;;  %vm138_vm9 = vcmask 781312   ;;  %s226_s0 = inlined_call_operand.vmem [shape: bf16[16,32], index: 0, kind: input, shape index: {}]   ;;  %s227_s2 = inlined_call_operand.vmem [shape: f32[1,32], index: 2, kind: input, shape index: {}]   ;;  %s228_s3 = inlined_call_operand.vmem [shape: f32[1,32], index: 3, kind: input, shape index: {}]   ;;  %s229_s1 = inlined_call_operand.vmem [shape: bf16[32,96], index: 1, kind: input, shape index: {}]   ;;  %s230_s4 = inlined_call_operand.vmem [shape: bf16[16,96], index: 4, kind: output, shape index: {}]  }
   0x1   :  { %v162_v0 = vld [vmem:[%s226_s0] sm:$0xff]   ;;  %168 = vrcp.f32 %v174_v5  ;;  %v160_v25 = vld [vmem:[%s229_s1 + $0x8] sm:$0xff] }
   0x2   :  { %v163_v1 = vunpack.c.l.bf16 %v162_v0  ;;  %v164_v3 = vunpack.c.h.bf16 %v162_v0  ;;  %128 = vmatpush.bf16.msra.mxu0 %v160_v25  ;;  %v159_v28 = vld [vmem:[%s229_s1] sm:$0xff] }
   0x3   :  { %v166_v38 = vld [vmem:[%s227_s2] ss:$0 sm:$0xff] }
   0x4   :  { %v27_v2 = vsel %vm26_vm0, %v163_v1, 0.0  ;;  %v30_v4 = vsel %vm26_vm0, %v164_v3, 0.0  ;;  %v167_v41 = vld [vmem:[%s228_s3] ss:$0 sm:$0xff] }
   0x5   :  { %28 = vadd.xlane.f32.xlu0 %v27_v2 }
   0x6   :  { %129 = vmatpush.bf16.msra.mxu0 %v159_v28 }
   0x7   :  { %v169_v6 = vpop.eup %168 }
   0x8   :  { %v34_v7 = vmul.f32 32.0, %v169_v6  ;;  %vm38_vm1 = vweird.f32 %v169_v6 }
   0xa   :  { %v35_v8 = vsub.f32 1.0, %v34_v7 }
   0xc   :  { %v36_v9 = vmul.f32 %v169_v6, %v35_v8 }
   0xd   :  { %31 = vadd.xlane.f32.xlu0 %v30_v4 }
   0xe   :  { %v37_v10 = vadd.f32 %v169_v6, %v36_v9 }
  0x10   :  { %v39_v11 = vsel %vm38_vm1, %v169_v6, %v37_v10 }
  0x78   :  { %v29_v12 = vpop.xlane.xlu0 %28 }
  0x79   :  { %v40_v13 = vmul.f32 %v39_v11, %v29_v12 }
  0x7b   :  { %v42_v14 = vsub.f32 %v163_v1, %v40_v13 }
  0x7d   :  { %v44_v15 = vmul.f32 %v42_v14, %v42_v14 }
  0x7f   :  { %v46_v16 = vsel %vm26_vm0, %v44_v15, 0.0 }
  0x80   :  { %47 = vadd.xlane.f32.xlu1 %v46_v16  ;;  %v32_v17 = vpop.xlane.xlu0 %31 }
  0x81   :  { %v41_v18 = vmul.f32 %v39_v11, %v32_v17 }
  0x83   :  { %v43_v19 = vsub.f32 %v164_v3, %v41_v18 }
  0x85   :  { %v45_v20 = vmul.f32 %v43_v19, %v43_v19 }
  0x87   :  { %v49_v21 = vsel %vm26_vm0, %v45_v20, 0.0 }
  0x88   :  { %50 = vadd.xlane.f32.xlu1 %v49_v21 }
  0xf3   :  { %v48_v22 = vpop.xlane.xlu1 %47 }
  0xf4   :  { %v52_v23 = vmul.f32 %v48_v22, %v39_v11 }
  0xf6   :  { %v54_v24 = vadd.f32 1e-05, %v52_v23 }
  0xf8   :  { %170 = vrsqrt.f32 %v54_v24  ;;  %vm62_vm3 = vweird.f32 %v54_v24 }
  0xfb   :  { %v51_v26 = vpop.xlane.xlu1 %50 }
  0xfc   :  { %v53_v27 = vmul.f32 %v51_v26, %v39_v11 }
  0xfe   :  { %v171_v29 = vpop.eup %170  ;;  %v55_v30 = vadd.f32 1e-05, %v53_v27 }
  0xff   :  { %v57_v31 = vmul.f32 %v171_v29, %v54_v24  ;;  %vm63_vm2 = vweird.f32 %v171_v29 }
 0x100   :  { %172 = vrsqrt.f32 %v55_v30  ;;  %vm64_vm4 = vmor %vm62_vm3, %vm63_vm2  ;;  %vm72_vm7 = vweird.f32 %v55_v30 }
 0x101   :  { %v58_v32 = vmul.f32 %v171_v29, %v57_v31 }
 0x103   :  { %v59_v33 = vmul.f32 0.5, %v58_v32 }
 0x105   :  { %v60_v34 = vsub.f32 1.5, %v59_v33 }
 0x106   :  { %v173_v35 = vpop.eup %172 }
 0x107   :  { %v61_v36 = vmul.f32 %v171_v29, %v60_v34  ;;  %v67_v37 = vmul.f32 %v173_v35, %v55_v30  ;;  %vm73_vm5 = vweird.f32 %v173_v35 }
 0x108   :  { %vm74_vm8 = vmor %vm72_vm7, %vm73_vm5 }
 0x109   :  { %v65_v39 = vsel %vm64_vm4, %v171_v29, %v61_v36  ;;  %v68_v40 = vmul.f32 %v173_v35, %v67_v37 }
 0x10a   :  { %v76_v42 = vmul.f32 %v65_v39, %v42_v14 }
 0x10b   :  { %v69_v43 = vmul.f32 0.5, %v68_v40 }
 0x10c   :  { %v82_v44 = vmul.f32 %v166_v38, %v76_v42 }
 0x10d   :  { %v70_v45 = vsub.f32 1.5, %v69_v43 }
 0x10e   :  { %v88_v46 = vadd.f32 %v167_v41, %v82_v44 }
 0x10f   :  { %v71_v47 = vmul.f32 %v173_v35, %v70_v45 }
 0x110   :  { %v90_v48 = vpack.c.bf16 %v88_v46, %v88_v46 }
 0x111   :  { %v75_v49 = vsel %vm74_vm8, %v173_v35, %v71_v47 }
 0x112   :  { %93 = vst.msk [vmem:[#allocation2] sm:$0xf] %vm92_vm6, %v90_v48  ;;  %v77_v50 = vmul.f32 %v75_v49, %v43_v19 }
 0x114   :  { %v83_v51 = vmul.f32 %v166_v38, %v77_v50 }
 0x116   :  { %v89_v52 = vadd.f32 %v167_v41, %v83_v51 }
 0x118   :  { %v91_v53 = vpack.c.bf16 %v89_v52, %v89_v52 }
 0x11a   :  { %94 = vst.msk [vmem:[#allocation2 + $0x4] sm:$0xf] %vm92_vm6, %v91_v53 }
 0x121   :  { %v158_v54 = vld [vmem:[#allocation2] sm:$0xff] }
 0x122   :  { %157 = vmatmul.msk.bf16.vlgmr.msra.gmra.mxu0 %vm26_vm0, %v158_v54 }
 0x19f   :  { %v131_v55 = vpop.f32.mrf.mxu0 }
 0x1a0   :  { %v136_v56 = vpack.c.bf16 %v131_v55, %v131_v55 }
 0x1a2   :  { %139 = vst.msk [vmem:[%s230_s4] sm:$0xf] %vm138_vm9, %v136_v56 }
 0x1a7   :  { %v133_v57 = vpop.f32.mrf.mxu0 }
 0x1a8   :  { %v137_v58 = vpack.c.bf16 %v133_v57, %v133_v57 }
 0x1aa   :  { %140 = vst.msk [vmem:[%s230_s4 + $0x4] sm:$0xf] %vm138_vm9, %v137_v58 }

// kernel: model_forward.25
= control target key start
LH: loop header
LB: loop body
LE: loop exit
PB: predicated region body
PF: predicated region fallthrough
CT: control target
= control target key end

     0   :  { %s558_s6 = smov 0   ;;  %s609_s0 = inlined_call_operand.vmem [shape: bf16[2,4,96], index: 0, kind: input, shape index: {}]   ;;  %s610_s1 = inlined_call_operand.vmem [shape: bf16[2,4,32], index: 1, kind: output, shape index: {}]  }
   0x1 LB: > { %s471_s7 = sadd.s32 4294967295, %s532_s6   ;;  %p475_p0 = scmp.ge.s32.totalorder %s532_s6, 1  ;;  %s532_s6 = sphi %s558_s6, %s11_s6  }
   0x2   : > { %p86_p1 = scmp.lt.s32.totalorder %s532_s6, 3 }
   0x4   : > { %p87_p2 = pnand %p475_p0, %p86_p1 }
   0x5   : > { %p104_p3 = scmp.lt.s32.totalorder (!%p87_p2), %s471_s7, 1  ;;  %s534_s12 = smov (!%p87_p2), 96  }
   0x6   : > { %90 = sbr.rel (%p87_p2) target bundleno = 930 (0x3a2), region = 24  ;;  %s535_s13 = smov (!%p87_p2), 88  }
   0x7   : > { %s536_s14 = smov (!%p87_p2), 120   ;;  %s537_s15 = smov (!%p87_p2), 72  }
   0x8   : > { %s538_s16 = smov (!%p87_p2), 104   ;;  %s539_s17 = smov (!%p87_p2), 64  }
   0x9   : > { %s540_s18 = smov (!%p87_p2), 80   ;;  %s541_s19 = smov (!%p87_p2), 112  }
   0xa   : > { %s542_s20 = smov (!%p87_p2), 56   ;;  %s543_s21 = smov (!%p87_p2), 48  }
   0xb   : > { %s612_s7 = smov (!%p104_p3, %s471_s7), 1  ;;  %vm120_vm0 = vcmask 64512   ;;  %vm139_vm1 = vcmask 27648   ;;  %vm159_vm2 = vcmask 1041408   ;;  %s544_s22 = smov 40   ;;  %vm155_vm3 = vcmask 31744  }
   0xc   : > { %s476_s8 = sshll.u32 %s612_s7, 1  ;;  %s545_s23 = smov 8   ;;  %vm179_vm4 = vcmask 58368   ;;  %vm258_vm5 = vcmask 123968   ;;  %vm337_vm6 = vcmask 189568   ;;  %vm416_vm7 = vcmask 255168  }
   0xd   : > { %s107_s11 = scalar_lea.vmem %s609_s0, %s476_s8  ;;  %s546_s24 = smov 24  }
   0xe   : > { %v113_v0 = vld [vmem:[%s107_s11] sm:$0x3]  ;;  %s111_s27 = scalar_lea.vmem %s610_s1, %s476_s8  ;;  %s547_s28 = smov 16  }
   0xf   : > { %115 = vst [vmem:[#allocation1] ss:$4 sm:$0xff] %v113_v0  ;;  %v181_v2 = vld [vmem:[%s107_s11] sm:$0x3] }
  0x10   : > { %v260_v6 = vld [vmem:[%s107_s11] sm:$0x3] }
  0x11   : > { %v339_v10 = vld [vmem:[%s107_s11] sm:$0x3] }
  0x16   : > { %v116_v1 = vld.sshfl [vmem:[#allocation1] sm:$0xff pattern:$0x73625140] }
  0x17   : > { %118 = vrot.lane.b32.xlu0 %v116_v1, %s534_s12  ;;  %150 = vst [vmem:[#allocation1] ss:$4 sm:$0xff] %v113_v0 }
  0x1e   : > { %v151_v3 = vld.sshfl [vmem:[#allocation1] sm:$0xff pattern:$0x73625140] }
  0x1f   : > { %183 = vst [vmem:[#allocation1] ss:$4 sm:$0xff] %v181_v2  ;;  %153 = vrot.lane.b32.xlu2 %v151_v3, %s539_s17 }
  0x26   : > { %v184_v4 = vld.sshfl [vmem:[#allocation1] sm:$0xff pattern:$0x73625140] }
  0x27   : > { %188 = vst [vmem:[#allocation1] ss:$4 sm:$0xff] %v181_v2 }
  0x2e   : > { %v189_v5 = vld.sshfl [vmem:[#allocation1] sm:$0xff pattern:$0x73625140] }
  0x2f   : > { %191 = vrot.lane.b32.xlu1 %v189_v5, %s535_s13  ;;  %222 = vst [vmem:[#allocation1] ss:$4 sm:$0xff] %v181_v2 }
  0x36   : > { %v223_v7 = vld.sshfl [vmem:[#allocation1] sm:$0xff pattern:$0x73625140] }
  0x37   : > { %262 = vst [vmem:[#allocation1] ss:$4 sm:$0xff] %v260_v6  ;;  %186 = vrot.lane.b32.xlu1 %v184_v4, %s536_s14 }
  0x3e   : > { %v263_v8 = vld.sshfl [vmem:[#allocation1] sm:$0xff pattern:$0x73625140] }
  0x3f   : > { %267 = vst [vmem:[#allocation1] ss:$4 sm:$0xff] %v260_v6 }
  0x46   : > { %v268_v9 = vld.sshfl [vmem:[#allocation1] sm:$0xff pattern:$0x73625140] }
  0x47   : > { %301 = vst [vmem:[#allocation1] ss:$4 sm:$0xff] %v260_v6  ;;  %270 = vrot.lane.b32.xlu2 %v268_v9, %s540_s18 }
  0x4e   : > { %v302_v11 = vld.sshfl [vmem:[#allocation1] sm:$0xff pattern:$0x73625140] }
  0x4f   : > { %341 = vst [vmem:[#allocation1] ss:$4 sm:$0xff] %v339_v10  ;;  %265 = vrot.lane.b32.xlu2 %v263_v8, %s541_s19 }
  0x56   : > { %v342_v12 = vld.sshfl [vmem:[#allocation1] sm:$0xff pattern:$0x73625140] }
  0x57   : > { %346 = vst [vmem:[#allocation1] ss:$4 sm:$0xff] %v339_v10 }
  0x5e   : > { %v347_v13 = vld.sshfl [vmem:[#allocation1] sm:$0xff pattern:$0x73625140] }
  0x5f   : > { %349 = vrot.lane.b32.xlu1 %v347_v13, %s537_s15  ;;  %380 = vst [vmem:[#allocation1] ss:$4 sm:$0xff] %v339_v10 }
  0x66   : > { %v381_v35 = vld.sshfl [vmem:[#allocation1] sm:$0xff pattern:$0x73625140] }
  0x67   : > { %344 = vrot.lane.b32.xlu1 %v342_v12, %s538_s16 }
  0x6f   : > { %225 = vrot.lane.b32.xlu1 %v223_v7, %s542_s20 }
  0x79   : > { %v154_v28 = vpop.permute.xlu2 %153 }
  0x7a   : > { %v161_v29 = vsel %vm159_vm2, %v154_v28, 0 }
  0x7b   : > { %170 = vmatpush.bf16.msra.mxu1 %v161_v29 }
  0x89   : > { %v119_v14 = vpop.permute.xlu0 %118 }
  0x8a   : > { %v124_v15 = vsel %vm120_vm0, %v119_v14, 0 }
  0x8b   : > { %133 = vmatpush.bf16.xpose.msra.mxu0 %v124_v15 }
  0x92   : > { %478 = vmatmul.msk.bf16.vlgmr.msra.gmra.mxu0 %vm120_vm0, %v113_v0 }
  0xa1   : > { %v192_v16 = vpop.permute.xlu1 %191  ;;  %v271_v32 = vpop.permute.xlu2 %270 }
  0xa2   : > { %v197_v17 = vsel %vm120_vm0, %v192_v16, 0  ;;  %v276_v33 = vsel %vm120_vm0, %v271_v32, 0 }
  0xa3   : > { %206 = vmatpush.bf16.xpose.msra.mxu2 %v197_v17  ;;  %285 = vmatpush.bf16.xpose.msrb.mxu1 %v276_v33 }
  0xa9   : > { %v187_v18 = vpop.permute.xlu1 %186  ;;  %v266_v41 = vpop.permute.xlu2 %265 }
  0xaa   : > { %480 = vmatmul.msk.bf16.vlgmr.msra.gmra.mxu2 %vm120_vm0, %v187_v18 }
  0xd1   : > { %v350_v19 = vpop.permute.xlu1 %349 }
  0xd2   : > { %v355_v20 = vsel %vm120_vm0, %v350_v19, 0 }
  0xd3   : > { %364 = vmatpush.bf16.xpose.msrb.mxu0 %v355_v20 }
  0xd9   : > { %v345_v21 = vpop.permute.xlu1 %344 }
  0xda   : > { %484 = vmatmul.msk.bf16.vlgmr.msrb.gmra.mxu0 %vm120_vm0, %v345_v21 }
  0xe1   : > { %v226_v46 = vpop.permute.xlu1 %225 }
  0xe2   : > { %v231_v47 = vsel %vm159_vm2, %v226_v46, 0 }
  0xe3   : > { %240 = vmatpush.bf16.msra.mxu3 %v231_v47 }
 0x10f   : > { %v135_v22 = vpop.f32.mrf.mxu0 }
 0x110   : > { %v140_v23 = vsel %vm139_vm1, %v135_v22, -inf }
 0x111   : > { %141 = vmax.xlane.f32.xlu0 %v140_v23 }
 0x117   : > { %v137_v24 = vpop.f32.mrf.mxu0 }
 0x12d   : > { %v208_v25 = vpop.f32.mrf.mxu2 }
 0x12e   : > { %v212_v26 = vsel %vm139_vm1, %v208_v25, -inf }
 0x12f   : > { %213 = vmax.xlane.f32.xlu2 %v212_v26 }
 0x135   : > { %v210_v27 = vpop.f32.mrf.mxu2 }
 0x147   : > { %383 = vrot.lane.b32.xlu2 %v381_v35, %s544_s22 }
 0x157   : > { %v366_v30 = vpop.f32.mrf.mxu0 }
 0x158   : > { %v370_v31 = vsel %vm139_vm1, %v366_v30, -inf }
 0x159   : > { %371 = vmax.xlane.f32.xlu0 %v370_v31 }
 0x15f   : > { %v368_v34 = vpop.f32.mrf.mxu0 }
 0x16d   : > { %304 = vrot.lane.b32.xlu0 %v302_v11, %s543_s21 }
 0x184   : > { %v142_v36 = vpop.xlane.xlu0 %141 }
 0x185   : > { %v143_v37 = vsub.f32 %v135_v22, %v142_v36 }
 0x187   : > { %v144_v38 = vmul.f32 1.442695, %v143_v37 }
 0x189   : > { %510 = vpow2.f32 %v144_v38 }
 0x18f   : > { %v511_v39 = vpop.eup %510 }
 0x190   : > { %v149_v40 = vpack.c.bf16 %v511_v39, %v511_v39  ;;  %v146_v11 = vsel %vm139_vm1, %v511_v39, 0.0 }
 0x192   : > { %479 = vmatmul.msk.bf16.vlgmr.msra.gmra.mxu1 %vm155_vm3, %v149_v40 }
 0x1a2   : > { %482 = vmatmul.msk.bf16.vlgmr.msrb.gmra.mxu1 %vm120_vm0, %v266_v41  ;;  %v214_v42 = vpop.xlane.xlu2 %213 }
 0x1a3   : > { %v215_v43 = vsub.f32 %v208_v25, %v214_v42 }
 0x1a5   : > { %v216_v44 = vmul.f32 1.442695, %v215_v43 }
 0x1a7   : > { %512 = vpow2.f32 %v216_v44 }
 0x1aa   : > { %v384_v50 = vpop.permute.xlu2 %383 }
 0x1ab   : > { %v389_v51 = vsel %vm159_vm2, %v384_v50, 0 }
 0x1ac   : > { %398 = vmatpush.bf16.msrb.mxu2 %v389_v51 }
 0x1ad   : > { %v513_v45 = vpop.eup %512 }
 0x1ae   : > { %v221_v48 = vpack.c.bf16 %v513_v45, %v513_v45  ;;  %v218_v49 = vsel %vm139_vm1, %v513_v45, 0.0 }
 0x1af   : > { %219 = vadd.xlane.f32.xlu0 %v218_v49 }
 0x1b0   : > { %481 = vmatmul.msk.bf16.vlgmr.msra.gmra.mxu3 %vm155_vm3, %v221_v48 }
 0x1cc   : > { %v372_v52 = vpop.xlane.xlu0 %371 }
 0x1cd   : > { %v373_v53 = vsub.f32 %v366_v30, %v372_v52 }
 0x1cf   : > { %v374_v54 = vmul.f32 1.442695, %v373_v53 }
 0x1d1   : > { %514 = vpow2.f32 %v374_v54 }
 0x1d7   : > { %v515_v55 = vpop.eup %514 }
 0x1d8   : > { %v379_v56 = vpack.c.bf16 %v515_v55, %v515_v55  ;;  %v376_v57 = vsel %vm139_vm1, %v515_v55, 0.0 }
 0x1d9   : > { %377 = vadd.xlane.f32.xlu2 %v376_v57 }
 0x1da   : > { %485 = vmatmul.msk.bf16.vlgmr.msrb.gmra.mxu2 %vm155_vm3, %v379_v56 }
 0x1df   : > { %v305_v1 = vpop.permute.xlu0 %304 }
 0x1e0   : > { %v310_v2 = vsel %vm159_vm2, %v305_v1, 0 }
 0x1e1   : > { %319 = vmatpush.bf16.msrb.mxu3 %v310_v2 }
 0x20f   : > { %v172_v58 = vpop.f32.mrf.mxu1 }
 0x217   : > { %v174_v59 = vpop.f32.mrf.mxu1 }
 0x21f   : > { %v287_v60 = vpop.f32.mrf.mxu1 }
 0x220   : > { %v291_v61 = vsel %vm139_vm1, %v287_v60, -inf }
 0x221   : > { %292 = vmax.xlane.f32.xlu1 %v291_v61 }
 0x222   : > { %v220_v12 = vpop.xlane.xlu0 %219 }
 0x227   : > { %v289_v62 = vpop.f32.mrf.mxu1 }
 0x233   : > { %v242_v63 = vpop.f32.mrf.mxu3 }
 0x23b   : > { %v244_v0 = vpop.f32.mrf.mxu3 }
 0x24c   : > { %v378_v13 = vpop.xlane.xlu2 %377 }
 0x25d   : > { %v400_v3 = vpop.f32.mrf.mxu2 }
 0x265   : > { %v402_v4 = vpop.f32.mrf.mxu2 }
 0x294   : > { %v293_v5 = vpop.xlane.xlu1 %292 }
 0x295   : > { %v294_v6 = vsub.f32 %v287_v60, %v293_v5 }
 0x297   : > { %v295_v7 = vmul.f32 1.442695, %v294_v6 }
 0x299   : > { %516 = vpow2.f32 %v295_v7 }
 0x29a   : > { %518 = vrcp.f32 %v220_v12 }
 0x29b   : > { %520 = vrcp.f32 %v378_v13 }
 0x29f   : > { %v517_v8 = vpop.eup %516 }
 0x2a0   : > { %v297_v9 = vsel %vm139_vm1, %v517_v8, 0.0  ;;  %v300_v10 = vpack.c.bf16 %v517_v8, %v517_v8  ;;  %v519_v14 = vpop.eup %518 }
 0x2a1   : > { %298 = vadd.xlane.f32.xlu1 %v297_v9  ;;  %v247_v15 = vmul.f32 %v519_v14, %v242_v63  ;;  %v521_v17 = vpop.eup %520 }
 0x2a2   : > { %483 = vmatmul.msk.bf16.vlgmr.msrb.gmra.mxu3 %vm155_vm3, %v300_v10  ;;  %v405_v19 = vmul.f32 %v521_v17, %v400_v3 }
 0x2a3   : > { %v248_v16 = vpack.c.bf16 %v247_v15, %v247_v15 }
 0x2a4   : > { %v406_v20 = vpack.c.bf16 %v405_v19, %v405_v19 }
 0x2a5   : > { %v250_v18 = vrot.slane %v248_v16, 2 }
 0x2a6   : > { %v408_v22 = vrot.slane %v406_v20, 2 }
 0x2a7   : > { %v253_v21 = vsel %vm159_vm2, %v248_v16, %v250_v18 }
 0x2a8   : > { %v411_v23 = vsel %vm159_vm2, %v406_v20, %v408_v22 }
 0x2a9   : > { %147 = vadd.xlane.f32.xlu1 %v146_v11 }
 0x2c2   : > { %255 = vrot.lane.b32.xlu1 %v253_v21, %s545_s23 }
 0x2ca   : > { %413 = vrot.lane.b32.xlu1 %v411_v23, %s546_s24 }
 0x314   : > { %v299_v24 = vpop.xlane.xlu1 %298 }
 0x31c   : > { %v148_v25 = vpop.xlane.xlu1 %147 }
 0x31d   : > { %522 = vrcp.f32 %v148_v25 }
 0x31e   : > { %524 = vrcp.f32 %v299_v24 }
 0x323   : > { %v523_v26 = vpop.eup %522 }
 0x324   : > { %v177_v27 = vmul.f32 %v523_v26, %v172_v58  ;;  %v525_v28 = vpop.eup %524 }
 0x325   : > { %v321_v29 = vpop.f32.mrf.mxu3 }
 0x326   : > { %v178_v30 = vpack.c.bf16 %v177_v27, %v177_v27  ;;  %v326_v31 = vmul.f32 %v525_v28, %v321_v29 }
 0x328   : > { %v327_v32 = vpack.c.bf16 %v326_v31, %v326_v31  ;;  %180 = vst.msk [vmem:[%s111_s27] sm:$0x3] %vm179_vm4, %v178_v30 }
 0x32a   : > { %v329_v33 = vrot.slane %v327_v32, 2 }
 0x32c   : > { %v332_v34 = vsel %vm159_vm2, %v327_v32, %v329_v33 }
 0x32d   : > { %v323_v35 = vpop.f32.mrf.mxu3  ;;  %334 = vrot.lane.b32.xlu0 %v332_v34, %s547_s28 }
 0x334   : > { %v256_v36 = vpop.permute.xlu1 %255 }
 0x335   : > { %259 = vst.msk [vmem:[%s111_s27] sm:$0x3] %vm258_vm5, %v256_v36 }
 0x33c   : > { %v414_v38 = vpop.permute.xlu1 %413 }
 0x39f   : > { %v335_v37 = vpop.permute.xlu0 %334 }
 0x3a0   : > { %338 = vst.msk [vmem:[%s111_s27] sm:$0x3] %vm337_vm6, %v335_v37 }
 0x3a1   : > { %417 = vst.msk [vmem:[%s111_s27] sm:$0x3] %vm416_vm7, %v414_v38 }
 0x3a2 PF: > { %s11_s6 = sadd.s32 1, %s532_s6  }
 0x3a3   : > { %p8_p4 = scmp.ge.s32.totalorder %s11_s6, 4  }
 0x3a5   :  { %10 = sbr.rel (!%p8_p4) target bundleno = 1 (0x1), region = 54 }

// kernel: model_forward.28
= control target key start
LH: loop header
LB: loop body
LE: loop exit
PB: predicated region body
PF: predicated region fallthrough
CT: control target
= control target key end

     0   :  { %vm115_vm0 = vcmask 257024   ;;  %s236_s1 = inlined_call_operand.vmem [shape: bf16[128,32], index: 1, kind: input, shape index: {}]   ;;  %s237_s2 = inlined_call_operand.vmem [shape: f32[1,32], index: 2, kind: input, shape index: {}]   ;;  %s238_s0 = inlined_call_operand.vmem [shape: bf16[16,128], index: 0, kind: input, shape index: {}]   ;;  %s239_s3 = inlined_call_operand.vmem [shape: bf16[16,32], index: 3, kind: input, shape index: {}]   ;;  %s240_s4 = inlined_call_operand.vmem [shape: bf16[16,32], index: 4, kind: output, shape index: {}]  }
   0x1   :  { %v166_v0 = vld [vmem:[%s236_s1 + $0x38] sm:$0xff]  ;;  %v165_v1 = vld [vmem:[%s236_s1 + $0x30] sm:$0xff]  ;;  %v164_v2 = vld [vmem:[%s236_s1 + $0x28] sm:$0xff] }
   0x2   :  { %93 = vmatpush.bf16.msra.mxu0 %v166_v0  ;;  %v163_v3 = vld [vmem:[%s236_s1 + $0x20] sm:$0xff]  ;;  %v162_v4 = vld [vmem:[%s236_s1 + $0x18] sm:$0xff]  ;;  %v161_v5 = vld [vmem:[%s236_s1 + $0x10] sm:$0xff] }
   0x3   :  { %v160_v6 = vld [vmem:[%s236_s1 + $0x8] sm:$0xff]  ;;  %v159_v7 = vld [vmem:[%s236_s1] sm:$0xff] }
   0x4   :  { %v158_v8 = vld [vmem:[%s238_s0] sm:$0xff] }
   0x5   :  { %v168_v9 = vld [vmem:[%s239_s3] sm:$0xff]  }
   0x6   :  { %94 = vmatpush.bf16.msra.mxu0 %v165_v1  ;;  %v171_v10 = vld [vmem:[%s237_s2] ss:$0 sm:$0xff]  ;;  %v169_v11 = vunpack.c.l.bf16 %v168_v9  ;;  %v170_v16 = vunpack.c.h.bf16 %v168_v9 }
   0xa   :  { %95 = vmatpush.bf16.msra.mxu0 %v164_v2 }
   0xe   :  { %96 = vmatpush.bf16.msra.mxu0 %v163_v3 }
  0x12   :  { %97 = vmatpush.bf16.msra.mxu0 %v162_v4 }
  0x16   :  { %98 = vmatpush.bf16.msra.mxu0 %v161_v5 }
  0x1a   :  { %99 = vmatpush.bf16.msra.mxu0 %v160_v6 }
  0x1e   :  { %100 = vmatpush.bf16.msra.mxu0 %v159_v7 }
  0x21   :  { %101 = vmatmul.bf16.vlgmr.msra.gmra.mxu0 %v158_v8 }
  0x9e   :  { %v102_v12 = vpop.f32.mrf.mxu0 }
  0x9f   :  { %v103_v13 = vadd.f32 %v171_v10, %v102_v12 }
  0xa1   :  { %v111_v14 = vadd.f32 %v169_v11, %v103_v13 }
  0xa3   :  { %v113_v15 = vpack.c.bf16 %v111_v14, %v111_v14 }
  0xa5   :  { %116 = vst.msk [vmem:[%s240_s4] sm:$0xf] %vm115_vm0, %v113_v15 }
  0xa6   :  { %v104_v17 = vpop.f32.mrf.mxu0 }
  0xa7   :  { %v105_v18 = vadd.f32 %v171_v10, %v104_v17 }
  0xa9   :  { %v112_v19 = vadd.f32 %v170_v16, %v105_v18 }
  0xab   :  { %v114_v20 = vpack.c.bf16 %v112_v19, %v112_v19 }
  0xad   :  { %117 = vst.msk [vmem:[%s240_s4 + $0x4] sm:$0xf] %vm115_vm0, %v114_v20 }

// kernel: model_forward.27
= control target key start
LH: loop header
LB: loop body
LE: loop exit
PB: predicated region body
PF: predicated region fallthrough
CT: control target
= control target key end

     0   :  { %vm29_vm0 = vcmask 261120   ;;  %v275_v5 = vmov 32.0   ;;  %vm95_vm6 = vcmask 257024   ;;  %s349_s0 = inlined_call_operand.vmem [shape: bf16[16,32], index: 0, kind: input, shape index: {}]   ;;  %s350_s2 = inlined_call_operand.vmem [shape: f32[1,32], index: 2, kind: input, shape index: {}]   ;;  %s351_s3 = inlined_call_operand.vmem [shape: f32[1,32], index: 3, kind: input, shape index: {}]   ;;  %s352_s4 = inlined_call_operand.vmem [shape: f32[1,128], index: 4, kind: input, shape index: {}]   ;;  %s353_s1 = inlined_call_operand.vmem [shape: bf16[32,128], index: 1, kind: input, shape index: {}]   ;;  %s354_s5 = inlined_call_operand.vmem [shape: bf16[16,128], index: 5, kind: output, shape index: {}]  }
   0x1   :  { %v248_v0 = vld [vmem:[%s349_s0] sm:$0xff]   ;;  %261 = vrcp.f32 %v275_v5  ;;  %v246_v25 = vld [vmem:[%s353_s1 + $0x8] sm:$0xff] }
   0x2   :  { %v249_v1 = vunpack.c.l.bf16 %v248_v0  ;;  %v250_v3 = vunpack.c.h.bf16 %v248_v0  ;;  %135 = vmatpush.bf16.msra.mxu0 %v246_v25  ;;  %v245_v28 = vld [vmem:[%s353_s1] sm:$0xff] }
   0x3   :  { %v258_v38 = vld [vmem:[%s350_s2] ss:$0 sm:$0xff] }
   0x4   :  { %v30_v2 = vsel %vm29_vm0, %v249_v1, 0.0  ;;  %v33_v4 = vsel %vm29_vm0, %v250_v3, 0.0  ;;  %v259_v41 = vld [vmem:[%s351_s3] ss:$0 sm:$0xff] }
   0x5   :  { %31 = vadd.xlane.f32.xlu0 %v30_v2  ;;  %v260_v55 = vld [vmem:[%s352_s4] ss:$0 sm:$0xff] }
   0x6   :  { %136 = vmatpush.bf16.msra.mxu0 %v245_v28 }
   0x7   :  { %v262_v6 = vpop.eup %261 }
   0x8   :  { %v37_v7 = vmul.f32 32.0, %v262_v6  ;;  %vm41_vm1 = vweird.f32 %v262_v6 }
   0xa   :  { %v38_v8 = vsub.f32 1.0, %v37_v7 }
   0xc   :  { %v39_v9 = vmul.f32 %v262_v6, %v38_v8 }
   0xd   :  { %34 = vadd.xlane.f32.xlu0 %v33_v4 }
   0xe   :  { %v40_v10 = vadd.f32 %v262_v6, %v39_v9 }
  0x10   :  { %v42_v11 = vsel %vm41_vm1, %v262_v6, %v40_v10 }
  0x78   :  { %v32_v12 = vpop.xlane.xlu0 %31 }
  0x79   :  { %v43_v13 = vmul.f32 %v42_v11, %v32_v12 }
  0x7b   :  { %v45_v14 = vsub.f32 %v249_v1, %v43_v13 }
  0x7d   :  { %v47_v15 = vmul.f32 %v45_v14, %v45_v14 }
  0x7f   :  { %v49_v16 = vsel %vm29_vm0, %v47_v15, 0.0 }
  0x80   :  { %50 = vadd.xlane.f32.xlu1 %v49_v16  ;;  %v35_v17 = vpop.xlane.xlu0 %34 }
  0x81   :  { %v44_v18 = vmul.f32 %v42_v11, %v35_v17 }
  0x83   :  { %v46_v19 = vsub.f32 %v250_v3, %v44_v18 }
  0x85   :  { %v48_v20 = vmul.f32 %v46_v19, %v46_v19 }
  0x87   :  { %v52_v21 = vsel %vm29_vm0, %v48_v20, 0.0 }
  0x88   :  { %53 = vadd.xlane.f32.xlu1 %v52_v21 }
  0xf3   :  { %v51_v22 = vpop.xlane.xlu1 %50 }
  0xf4   :  { %v55_v23 = vmul.f32 %v51_v22, %v42_v11 }
  0xf6   :  { %v57_v24 = vadd.f32 1e-05, %v55_v23 }
  0xf8   :  { %263 = vrsqrt.f32 %v57_v24  ;;  %vm65_vm3 = vweird.f32 %v57_v24 }
  0xfb   :  { %v54_v26 = vpop.xlane.xlu1 %53 }
  0xfc   :  { %v56_v27 = vmul.f32 %v54_v26, %v42_v11 }
  0xfe   :  { %v264_v29 = vpop.eup %263  ;;  %v58_v30 = vadd.f32 1e-05, %v56_v27 }
  0xff   :  { %v60_v31 = vmul.f32 %v264_v29, %v57_v24  ;;  %vm66_vm2 = vweird.f32 %v264_v29 }
 0x100   :  { %265 = vrsqrt.f32 %v58_v30  ;;  %vm67_vm4 = vmor %vm65_vm3, %vm66_vm2  ;;  %vm75_vm7 = vweird.f32 %v58_v30 }
 0x101   :  { %v61_v32 = vmul.f32 %v264_v29, %v60_v31 }
 0x103   :  { %v62_v33 = vmul.f32 0.5, %v61_v32 }
 0x105   :  { %v63_v34 = vsub.f32 1.5, %v62_v33 }
 0x106   :  { %v266_v35 = vpop.eup %265 }
 0x107   :  { %v64_v36 = vmul.f32 %v264_v29, %v63_v34  ;;  %v70_v37 = vmul.f32 %v266_v35, %v58_v30  ;;  %vm76_vm5 = vweird.f32 %v266_v35 }
 0x108   :  { %vm77_vm8 = vmor %vm75_vm7, %vm76_vm5 }
 0x109   :  { %v68_v39 = vsel %vm67_vm4, %v264_v29, %v64_v36  ;;  %v71_v40 = vmul.f32 %v266_v35, %v70_v37 }
 0x10a   :  { %v79_v42 = vmul.f32 %v68_v39, %v45_v14 }
 0x10b   :  { %v72_v43 = vmul.f32 0.5, %v71_v40 }
 0x10c   :  { %v85_v44 = vmul.f32 %v258_v38, %v79_v42 }
 0x10d   :  { %v73_v45 = vsub.f32 1.5, %v72_v43 }
 0x10e   :  { %v91_v46 = vadd.f32 %v259_v41, %v85_v44 }
 0x10f   :  { %v74_v47 = vmul.f32 %v266_v35, %v73_v45 }
 0x110   :  { %v93_v48 = vpack.c.bf16 %v91_v46, %v91_v46 }
 0x111   :  { %v78_v49 = vsel %vm77_vm8, %v266_v35, %v74_v47 }
 0x112   :  { %96 = vst.msk [vmem:[#allocation2] sm:$0xf] %vm95_vm6, %v93_v48  ;;  %v80_v50 = vmul.f32 %v78_v49, %v46_v19 }
 0x114   :  { %v86_v51 = vmul.f32 %v258_v38, %v80_v50 }
 0x116   :  { %v92_v52 = vadd.f32 %v259_v41, %v86_v51 }
 0x118   :  { %v94_v53 = vpack.c.bf16 %v92_v52, %v92_v52  ;;  %v276_v52 = vmov -1.0  }
 0x11a   :  { %97 = vst.msk [vmem:[#allocation2 + $0x4] sm:$0xf] %vm95_vm6, %v94_v53 }
 0x121   :  { %v244_v54 = vld [vmem:[#allocation2] sm:$0xff] }
 0x122   :  { %243 = vmatmul.msk.bf16.vlgmr.msra.gmra.mxu0 %vm29_vm0, %v244_v54 }
 0x19f   :  { %v138_v56 = vpop.f32.mrf.mxu0 }
 0x1a0   :  { %v330_v57 = vadd.f32 %v260_v55, %v138_v56 }
 0x1a2   :  { %v333_v58 = vmul.f32 0.70710677, %v330_v57 }
 0x1a4   :  { %v151_v59 = vand.u32 2147483647, %v333_v58  ;;  %vm147_vm1 = vcmp.ge.f32.partialorder %v333_v58, 0.0 }
 0x1a5   :  { %v149_v53 = vsel %vm147_vm1, 1.0, %v276_v52 }
 0x1a6   :  { %v153_v60 = vmul.f32 0.3275911, %v151_v59  ;;  %v205_v17 = vsub.f32 0.0, %v151_v59 }
 0x1a7   :  { %v140_v61 = vpop.f32.mrf.mxu0 }
 0x1a8   :  { %v155_v62 = vadd.f32 1.0, %v153_v60  ;;  %v336_v63 = vadd.f32 %v260_v55, %v140_v61  ;;  %v207_v24 = vmul.f32 %v205_v17, %v151_v59 }
 0x1aa   :  { %267 = vrcp.f32 %v155_v62  ;;  %v339_v0 = vmul.f32 0.70710677, %v336_v63  ;;  %v168_v7 = vand.u32 2147483648, %v155_v62  ;;  %v166_v9 = vand.u32 2147483647, %v155_v62 }
 0x1ab   :  { %vm162_vm10 = vweird.f32 %v155_v62  ;;  %v209_v30 = vmul.f32 1.442695, %v207_v24 }
 0x1ac   :  { %v152_v1 = vand.u32 2147483647, %v339_v0  ;;  %v169_v11 = vor.u32 1.1754944e-38, %v168_v7  ;;  %vm167_vm12 = vcmp.eq.f32.partialorder %v166_v9, 8.507059e+37  ;;  %vm148_vm2 = vcmp.ge.f32.partialorder %v339_v0, 0.0 }
 0x1ad   :  { %v150_v59 = vsel %vm148_vm2, 1.0, %v276_v52 }
 0x1ae   :  { %v154_v2 = vmul.f32 0.3275911, %v152_v1  ;;  %v206_v32 = vsub.f32 0.0, %v152_v1 }
 0x1b0   :  { %v268_v3 = vpop.eup %267  ;;  %v156_v5 = vadd.f32 1.0, %v154_v2  ;;  %v208_v37 = vmul.f32 %v206_v32, %v152_v1  ;;  %v144_v1 = vmul.f32 0.5, %v336_v63 }
 0x1b1   :  { %v158_v4 = vmul.f32 %v268_v3, %v155_v62  ;;  %vm163_vm9 = vweird.f32 %v268_v3  ;;  %v143_v62 = vmul.f32 0.5, %v330_v57 }
 0x1b2   :  { %269 = vrcp.f32 %v156_v5  ;;  %vm164_vm11 = vmor %vm162_vm10, %vm163_vm9  ;;  %v183_v20 = vand.u32 2147483648, %v156_v5  ;;  %v181_v22 = vand.u32 2147483647, %v156_v5  ;;  %vm177_vm14 = vweird.f32 %v156_v5 }
 0x1b3   :  { %v159_v6 = vsub.f32 1.0, %v158_v4  ;;  %271 = vpow2.f32 %v209_v30  ;;  %v211_v42 = vmul.f32 1.442695, %v208_v37 }
 0x1b4   :  { %v184_v27 = vor.u32 1.1754944e-38, %v183_v20  ;;  %vm182_vm0 = vcmp.eq.f32.partialorder %v181_v22, 8.507059e+37 }
 0x1b5   :  { %v160_v8 = vmul.f32 %v268_v3, %v159_v6  ;;  %273 = vpow2.f32 %v211_v42 }
 0x1b7   :  { %v161_v10 = vadd.f32 %v268_v3, %v160_v8 }
 0x1b8   :  { %v270_v12 = vpop.eup %269 }
 0x1b9   :  { %v165_v13 = vsel %vm164_vm11, %v268_v3, %v161_v10  ;;  %v173_v15 = vmul.f32 %v270_v12, %v156_v5  ;;  %vm178_vm13 = vweird.f32 %v270_v12  ;;  %v272_v44 = vpop.eup %271 }
 0x1ba   :  { %v170_v14 = vsel %vm167_vm12, %v169_v11, %v165_v13  ;;  %vm179_vm15 = vmor %vm177_vm14, %vm178_vm13 }
 0x1bb   :  { %v187_v16 = vmul.f32 1.0614054, %v170_v14  ;;  %v174_v18 = vsub.f32 1.0, %v173_v15  ;;  %v274_v51 = vpop.eup %273 }
 0x1bd   :  { %v189_v19 = vadd.f32 -1.4531521, %v187_v16  ;;  %v175_v21 = vmul.f32 %v270_v12, %v174_v18 }
 0x1bf   :  { %v191_v23 = vmul.f32 %v189_v19, %v170_v14  ;;  %v176_v25 = vadd.f32 %v270_v12, %v175_v21 }
 0x1c1   :  { %v193_v26 = vadd.f32 1.4214138, %v191_v23  ;;  %v180_v28 = vsel %vm179_vm15, %v270_v12, %v176_v25 }
 0x1c2   :  { %v185_v31 = vsel %vm182_vm0, %v184_v27, %v180_v28 }
 0x1c3   :  { %v195_v29 = vmul.f32 %v193_v26, %v170_v14  ;;  %v188_v33 = vmul.f32 1.0614054, %v185_v31 }
 0x1c5   :  { %v197_v34 = vadd.f32 -0.28449672, %v195_v29  ;;  %v190_v35 = vadd.f32 -1.4531521, %v188_v33 }
 0x1c7   :  { %v199_v36 = vmul.f32 %v197_v34, %v170_v14  ;;  %v192_v38 = vmul.f32 %v190_v35, %v185_v31 }
 0x1c9   :  { %v201_v39 = vadd.f32 0.2548296, %v199_v36  ;;  %v194_v40 = vadd.f32 1.4214138, %v192_v38 }
 0x1cb   :  { %v203_v41 = vmul.f32 %v201_v39, %v170_v14  ;;  %v196_v43 = vmul.f32 %v194_v40, %v185_v31 }
 0x1cd   :  { %v213_v45 = vmul.f32 %v272_v44, %v203_v41  ;;  %v198_v46 = vadd.f32 -0.28449672, %v196_v43 }
 0x1cf   :  { %v200_v47 = vmul.f32 %v198_v46, %v185_v31  ;;  %v215_v48 = vsub.f32 1.0, %v213_v45 }
 0x1d1   :  { %v202_v49 = vadd.f32 0.2548296, %v200_v47  ;;  %v217_v54 = vmul.f32 %v215_v48, %v149_v53 }
 0x1d3   :  { %v204_v50 = vmul.f32 %v202_v49, %v185_v31  ;;  %v219_v60 = vadd.f32 1.0, %v217_v54 }
 0x1d5   :  { %v214_v55 = vmul.f32 %v274_v51, %v204_v50  ;;  %v221_v58 = vmul.f32 %v219_v60, %v143_v62 }
 0x1d7   :  { %v216_v56 = vsub.f32 1.0, %v214_v55 }
 0x1d9   :  { %v218_v61 = vmul.f32 %v216_v56, %v150_v59 }
 0x1db   :  { %v220_v2 = vadd.f32 1.0, %v218_v61 }
 0x1dd   :  { %v222_v3 = vmul.f32 %v220_v2, %v144_v1 }
 0x1df   :  { %v254_v4 = vpack.c.bf16 %v222_v3, %v221_v58 }
 0x1e1   :  { %255 = vst [vmem:[%s354_s5] sm:$0xff] %v254_v4  }

// kernel: model_forward.34
= control target key start
LH: loop header
LB: loop body
LE: loop exit
PB: predicated region body
PF: predicated region fallthrough
CT: control target
= control target key end

     0   :  { %vm26_vm0 = vcmask 261120   ;;  %v174_v5 = vmov 32.0   ;;  %vm92_vm6 = vcmask 257024   ;;  %s230_s0 = inlined_call_operand.vmem [shape: bf16[16,32], index: 0, kind: input, shape index: {}]   ;;  %s231_s2 = inlined_call_operand.vmem [shape: f32[1,32], index: 2, kind: input, shape index: {}]   ;;  %s232_s3 = inlined_call_operand.vmem [shape: f32[1,32], index: 3, kind: input, shape index: {}]   ;;  %s233_s1 = inlined_call_operand.vmem [shape: bf16[32,32], index: 1, kind: input, shape index: {}]   ;;  %s234_s4 = inlined_call_operand.vmem [shape: bf16[16,32], index: 4, kind: output, shape index: {}]  }
   0x1   :  { %v162_v0 = vld [vmem:[%s230_s0] sm:$0xff]   ;;  %168 = vrcp.f32 %v174_v5  ;;  %v160_v25 = vld [vmem:[%s233_s1 + $0x8] sm:$0xff] }
   0x2   :  { %v163_v1 = vunpack.c.l.bf16 %v162_v0  ;;  %v164_v3 = vunpack.c.h.bf16 %v162_v0  ;;  %128 = vmatpush.bf16.msra.mxu0 %v160_v25  ;;  %v159_v28 = vld [vmem:[%s233_s1] sm:$0xff] }
   0x3   :  { %v166_v38 = vld [vmem:[%s231_s2] ss:$0 sm:$0xff] }
   0x4   :  { %v27_v2 = vsel %vm26_vm0, %v163_v1, 0.0  ;;  %v30_v4 = vsel %vm26_vm0, %v164_v3, 0.0  ;;  %v167_v41 = vld [vmem:[%s232_s3] ss:$0 sm:$0xff] }
   0x5   :  { %28 = vadd.xlane.f32.xlu0 %v27_v2 }
   0x6   :  { %129 = vmatpush.bf16.msra.mxu0 %v159_v28 }
   0x7   :  { %v169_v6 = vpop.eup %168 }
   0x8   :  { %v34_v7 = vmul.f32 32.0, %v169_v6  ;;  %vm38_vm1 = vweird.f32 %v169_v6 }
   0xa   :  { %v35_v8 = vsub.f32 1.0, %v34_v7 }
   0xc   :  { %v36_v9 = vmul.f32 %v169_v6, %v35_v8 }
   0xd   :  { %31 = vadd.xlane.f32.xlu0 %v30_v4 }
   0xe   :  { %v37_v10 = vadd.f32 %v169_v6, %v36_v9 }
  0x10   :  { %v39_v11 = vsel %vm38_vm1, %v169_v6, %v37_v10 }
  0x78   :  { %v29_v12 = vpop.xlane.xlu0 %28 }
  0x79   :  { %v40_v13 = vmul.f32 %v39_v11, %v29_v12 }
  0x7b   :  { %v42_v14 = vsub.f32 %v163_v1, %v40_v13 }
  0x7d   :  { %v44_v15 = vmul.f32 %v42_v14, %v42_v14 }
  0x7f   :  { %v46_v16 = vsel %vm26_vm0, %v44_v15, 0.0 }
  0x80   :  { %47 = vadd.xlane.f32.xlu1 %v46_v16  ;;  %v32_v17 = vpop.xlane.xlu0 %31 }
  0x81   :  { %v41_v18 = vmul.f32 %v39_v11, %v32_v17 }
  0x83   :  { %v43_v19 = vsub.f32 %v164_v3, %v41_v18 }
  0x85   :  { %v45_v20 = vmul.f32 %v43_v19, %v43_v19 }
  0x87   :  { %v49_v21 = vsel %vm26_vm0, %v45_v20, 0.0 }
  0x88   :  { %50 = vadd.xlane.f32.xlu1 %v49_v21 }
  0xf3   :  { %v48_v22 = vpop.xlane.xlu1 %47 }
  0xf4   :  { %v52_v23 = vmul.f32 %v48_v22, %v39_v11 }
  0xf6   :  { %v54_v24 = vadd.f32 1e-05, %v52_v23 }
  0xf8   :  { %170 = vrsqrt.f32 %v54_v24  ;;  %vm62_vm3 = vweird.f32 %v54_v24 }
  0xfb   :  { %v51_v26 = vpop.xlane.xlu1 %50 }
  0xfc   :  { %v53_v27 = vmul.f32 %v51_v26, %v39_v11 }
  0xfe   :  { %v171_v29 = vpop.eup %170  ;;  %v55_v30 = vadd.f32 1e-05, %v53_v27 }
  0xff   :  { %v57_v31 = vmul.f32 %v171_v29, %v54_v24  ;;  %vm63_vm2 = vweird.f32 %v171_v29 }
 0x100   :  { %172 = vrsqrt.f32 %v55_v30  ;;  %vm64_vm4 = vmor %vm62_vm3, %vm63_vm2  ;;  %vm72_vm7 = vweird.f32 %v55_v30 }
 0x101   :  { %v58_v32 = vmul.f32 %v171_v29, %v57_v31 }
 0x103   :  { %v59_v33 = vmul.f32 0.5, %v58_v32 }
 0x105   :  { %v60_v34 = vsub.f32 1.5, %v59_v33 }
 0x106   :  { %v173_v35 = vpop.eup %172 }
 0x107   :  { %v61_v36 = vmul.f32 %v171_v29, %v60_v34  ;;  %v67_v37 = vmul.f32 %v173_v35, %v55_v30  ;;  %vm73_vm5 = vweird.f32 %v173_v35 }
 0x108   :  { %vm74_vm8 = vmor %vm72_vm7, %vm73_vm5 }
 0x109   :  { %v65_v39 = vsel %vm64_vm4, %v171_v29, %v61_v36  ;;  %v68_v40 = vmul.f32 %v173_v35, %v67_v37 }
 0x10a   :  { %v76_v42 = vmul.f32 %v65_v39, %v42_v14 }
 0x10b   :  { %v69_v43 = vmul.f32 0.5, %v68_v40 }
 0x10c   :  { %v82_v44 = vmul.f32 %v166_v38, %v76_v42 }
 0x10d   :  { %v70_v45 = vsub.f32 1.5, %v69_v43 }
 0x10e   :  { %v88_v46 = vadd.f32 %v167_v41, %v82_v44 }
 0x10f   :  { %v71_v47 = vmul.f32 %v173_v35, %v70_v45 }
 0x110   :  { %v90_v48 = vpack.c.bf16 %v88_v46, %v88_v46 }
 0x111   :  { %v75_v49 = vsel %vm74_vm8, %v173_v35, %v71_v47 }
 0x112   :  { %93 = vst.msk [vmem:[#allocation2] sm:$0xf] %vm92_vm6, %v90_v48  ;;  %v77_v50 = vmul.f32 %v75_v49, %v43_v19 }
 0x114   :  { %v83_v51 = vmul.f32 %v166_v38, %v77_v50 }
 0x116   :  { %v89_v52 = vadd.f32 %v167_v41, %v83_v51 }
 0x118   :  { %v91_v53 = vpack.c.bf16 %v89_v52, %v89_v52 }
 0x11a   :  { %94 = vst.msk [vmem:[#allocation2 + $0x4] sm:$0xf] %vm92_vm6, %v91_v53 }
 0x121   :  { %v158_v54 = vld [vmem:[#allocation2] sm:$0xff] }
 0x122   :  { %157 = vmatmul.msk.bf16.vlgmr.msra.gmra.mxu0 %vm26_vm0, %v158_v54 }
 0x19f   :  { %v131_v55 = vpop.f32.mrf.mxu0 }
 0x1a0   :  { %v136_v56 = vpack.c.bf16 %v131_v55, %v131_v55 }
 0x1a2   :  { %139 = vst.msk [vmem:[%s234_s4] sm:$0xf] %vm92_vm6, %v136_v56 }
 0x1a7   :  { %v133_v57 = vpop.f32.mrf.mxu0 }
 0x1a8   :  { %v137_v58 = vpack.c.bf16 %v133_v57, %v133_v57 }
 0x1aa   :  { %140 = vst.msk [vmem:[%s234_s4 + $0x4] sm:$0xf] %vm92_vm6, %v137_v58 }

// kernel: model_forward.36
= control target key start
LH: loop header
LB: loop body
LE: loop exit
PB: predicated region body
PF: predicated region fallthrough
CT: control target
= control target key end

     0   :  { %s517_s6 = smov 0   ;;  %s571_s0 = inlined_call_operand.vmem [shape: bf16[2,8,96], index: 0, kind: input, shape index: {}]   ;;  %s572_s1 = inlined_call_operand.vmem [shape: bf16[2,8,32], index: 1, kind: output, shape index: {}]  }
   0x1 LB: > { %s430_s7 = sadd.s32 4294967295, %s491_s6   ;;  %p434_p0 = scmp.ge.s32.totalorder %s491_s6, 1  ;;  %s491_s6 = sphi %s517_s6, %s11_s6  }
   0x2   : > { %p86_p1 = scmp.lt.s32.totalorder %s491_s6, 3 }
   0x4   : > { %p87_p2 = pnand %p434_p0, %p86_p1 }
   0x5   : > { %p104_p3 = scmp.lt.s32.totalorder (!%p87_p2), %s430_s7, 1  ;;  %s493_s12 = smov (!%p87_p2), 96  }
   0x6   : > { %90 = sbr.rel (%p87_p2) target bundleno = 923 (0x39b), region = 24  ;;  %s494_s13 = smov (!%p87_p2), 88  }
   0x7   : > { %s495_s14 = smov (!%p87_p2), 120   ;;  %s496_s15 = smov (!%p87_p2), 72  }
   0x8   : > { %s497_s16 = smov (!%p87_p2), 104   ;;  %s498_s17 = smov (!%p87_p2), 64  }
   0x9   : > { %s499_s18 = smov (!%p87_p2), 80   ;;  %s500_s19 = smov (!%p87_p2), 112  }
   0xa   : > { %s501_s20 = smov (!%p87_p2), 56   ;;  %s502_s21 = smov (!%p87_p2), 40  }
   0xb   : > { %s574_s7 = smov (!%p104_p3, %s430_s7), 1  ;;  %vm119_vm0 = vcmask 64512   ;;  %vm154_vm1 = vcmask 1043456   ;;  %s503_s22 = smov 48   ;;  %vm174_vm2 = vcmask 60416   ;;  %vm241_vm3 = vcmask 126016  }
   0xc   : > { %s435_s8 = sshll.u32 %s574_s7, 2  ;;  %s504_s23 = smov 8   ;;  %vm308_vm4 = vcmask 191616   ;;  %vm375_vm5 = vcmask 257216  }
   0xd   : > { %s533_s11 = scalar_lea.vmem %s571_s0, %s435_s8  ;;  %s505_s24 = smov 24  }
   0xe   : > { %v113_v0 = vld [vmem:[%s533_s11] sm:$0xf]  ;;  %s111_s27 = scalar_lea.vmem %s572_s1, %s435_s8  ;;  %s506_s28 = smov 16  }
   0xf   : > { %v176_v1 = vld [vmem:[%s533_s11] sm:$0xf]  ;;  %v115_v2 = vunpack.c.l.b16 %v113_v0 }
  0x10   : > { %v178_v3 = vunpack.c.l.b16 %v176_v1  ;;  %v310_v6 = vld [vmem:[%s533_s11] sm:$0xf] }
  0x11   : > { %v116_v4 = vpack.c.b16 %v115_v2, %v115_v2  ;;  %v312_v7 = vunpack.c.l.b16 %v310_v6  ;;  %v243_v17 = vld [vmem:[%s533_s11] sm:$0xf] }
  0x12   : > { %v179_v5 = vpack.c.b16 %v178_v3, %v178_v3  ;;  %v245_v18 = vunpack.c.l.b16 %v243_v17 }
  0x13   : > { %117 = vrot.lane.b32.xlu0 %v116_v4, %s493_s12  ;;  %v313_v8 = vpack.c.b16 %v312_v7, %v312_v7  ;;  %149 = vrot.lane.b32.xlu2 %v116_v4, %s498_s17 }
  0x14   : > { %182 = vrot.lane.b32.xlu1 %v179_v5, %s494_s13  ;;  %v246_v19 = vpack.c.b16 %v245_v18, %v245_v18 }
  0x1b   : > { %249 = vrot.lane.b32.xlu2 %v246_v19, %s499_s18 }
  0x1c   : > { %180 = vrot.lane.b32.xlu1 %v179_v5, %s495_s14 }
  0x23   : > { %247 = vrot.lane.b32.xlu2 %v246_v19, %s500_s19 }
  0x24   : > { %316 = vrot.lane.b32.xlu1 %v313_v8, %s496_s15 }
  0x2c   : > { %314 = vrot.lane.b32.xlu1 %v313_v8, %s497_s16 }
  0x34   : > { %213 = vrot.lane.b32.xlu1 %v179_v5, %s501_s20 }
  0x6d   : > { %v150_v26 = vpop.permute.xlu2 %149 }
  0x6e   : > { %v156_v28 = vsel %vm154_vm1, %v150_v26, 0 }
  0x6f   : > { %165 = vmatpush.bf16.msra.mxu1 %v156_v28 }
  0x75   : > { %v250_v30 = vpop.permute.xlu2 %249 }
  0x76   : > { %v255_v32 = vsel %vm119_vm0, %v250_v30, 0 }
  0x77   : > { %264 = vmatpush.bf16.xpose.msrb.mxu1 %v255_v32 }
  0x7d   : > { %v248_v38 = vpop.permute.xlu2 %247 }
  0x85   : > { %v118_v9 = vpop.permute.xlu0 %117 }
  0x86   : > { %v183_v10 = vpop.permute.xlu1 %182  ;;  %v124_v11 = vsel %vm119_vm0, %v118_v9, 0 }
  0x87   : > { %v188_v12 = vsel %vm119_vm0, %v183_v10, 0  ;;  %133 = vmatpush.bf16.xpose.msra.mxu0 %v124_v11 }
  0x88   : > { %197 = vmatpush.bf16.xpose.msra.mxu2 %v188_v12 }
  0x8e   : > { %v181_v13 = vpop.permute.xlu1 %180  ;;  %437 = vmatmul.msk.bf16.vlgmr.msra.gmra.mxu0 %vm119_vm0, %v113_v0 }
  0x8f   : > { %439 = vmatmul.msk.bf16.vlgmr.msra.gmra.mxu2 %vm119_vm0, %v181_v13 }
  0x96   : > { %v317_v14 = vpop.permute.xlu1 %316 }
  0x97   : > { %v322_v15 = vsel %vm119_vm0, %v317_v14, 0 }
  0x98   : > { %331 = vmatpush.bf16.xpose.msrb.mxu0 %v322_v15 }
  0x9e   : > { %v315_v16 = vpop.permute.xlu1 %314 }
  0x9f   : > { %443 = vmatmul.msk.bf16.vlgmr.msrb.gmra.mxu0 %vm119_vm0, %v315_v16 }
  0xa6   : > { %v214_v43 = vpop.permute.xlu1 %213 }
  0xa7   : > { %v219_v44 = vsel %vm154_vm1, %v214_v43, 0 }
  0xa8   : > { %228 = vmatpush.bf16.msra.mxu3 %v219_v44 }
 0x10b   : > { %v135_v20 = vpop.f32.mrf.mxu0 }
 0x10c   : > { %v139_v21 = vsel %vm119_vm0, %v135_v20, -inf }
 0x10d   : > { %140 = vmax.xlane.f32.xlu0 %v139_v21 }
 0x112   : > { %v199_v22 = vpop.f32.mrf.mxu2 }
 0x113   : > { %v137_v23 = vpop.f32.mrf.mxu0  ;;  %v203_v25 = vsel %vm119_vm0, %v199_v22, -inf }
 0x114   : > { %204 = vmax.xlane.f32.xlu2 %v203_v25 }
 0x11a   : > { %v201_v24 = vpop.f32.mrf.mxu2 }
 0x11c   : > { %v333_v27 = vpop.f32.mrf.mxu0 }
 0x11d   : > { %v337_v29 = vsel %vm119_vm0, %v333_v27, -inf }
 0x11e   : > { %338 = vmax.xlane.f32.xlu0 %v337_v29 }
 0x124   : > { %v335_v31 = vpop.f32.mrf.mxu0 }
 0x12c   : > { %347 = vrot.lane.b32.xlu2 %v313_v8, %s502_s21 }
 0x132   : > { %280 = vrot.lane.b32.xlu0 %v246_v19, %s503_s22 }
 0x180   : > { %v141_v33 = vpop.xlane.xlu0 %140 }
 0x181   : > { %v142_v34 = vsub.f32 %v135_v20, %v141_v33 }
 0x183   : > { %v143_v35 = vmul.f32 1.442695, %v142_v34 }
 0x185   : > { %469 = vpow2.f32 %v143_v35 }
 0x187   : > { %v205_v39 = vpop.xlane.xlu2 %204 }
 0x188   : > { %v206_v40 = vsub.f32 %v199_v22, %v205_v39 }
 0x18a   : > { %v207_v41 = vmul.f32 1.442695, %v206_v40 }
 0x18b   : > { %v470_v36 = vpop.eup %469 }
 0x18c   : > { %v148_v37 = vpack.c.bf16 %v470_v36, %v470_v36  ;;  %471 = vpow2.f32 %v207_v41  ;;  %v145_v8 = vsel %vm119_vm0, %v470_v36, 0.0 }
 0x18e   : > { %438 = vmatmul.msk.bf16.vlgmr.msra.gmra.mxu1 %vm119_vm0, %v148_v37 }
 0x18f   : > { %v348_v46 = vpop.permute.xlu2 %347 }
 0x190   : > { %v353_v48 = vsel %vm154_vm1, %v348_v46, 0 }
 0x191   : > { %362 = vmatpush.bf16.msrb.mxu2 %v353_v48  ;;  %v339_v49 = vpop.xlane.xlu0 %338 }
 0x192   : > { %v472_v42 = vpop.eup %471  ;;  %v340_v50 = vsub.f32 %v333_v27, %v339_v49 }
 0x193   : > { %v212_v45 = vpack.c.bf16 %v472_v42, %v472_v42  ;;  %v209_v47 = vsel %vm119_vm0, %v472_v42, 0.0 }
 0x194   : > { %210 = vadd.xlane.f32.xlu0 %v209_v47  ;;  %v341_v51 = vmul.f32 1.442695, %v340_v50 }
 0x195   : > { %440 = vmatmul.msk.bf16.vlgmr.msra.gmra.mxu3 %vm119_vm0, %v212_v45 }
 0x196   : > { %473 = vpow2.f32 %v341_v51 }
 0x19c   : > { %v474_v52 = vpop.eup %473 }
 0x19d   : > { %v346_v53 = vpack.c.bf16 %v474_v52, %v474_v52  ;;  %v343_v54 = vsel %vm119_vm0, %v474_v52, 0.0 }
 0x19e   : > { %441 = vmatmul.msk.bf16.vlgmr.msrb.gmra.mxu1 %vm119_vm0, %v248_v38  ;;  %344 = vadd.xlane.f32.xlu2 %v343_v54 }
 0x19f   : > { %444 = vmatmul.msk.bf16.vlgmr.msrb.gmra.mxu2 %vm119_vm0, %v346_v53 }
 0x1a4   : > { %v281_v61 = vpop.permute.xlu0 %280 }
 0x1a5   : > { %v286_v63 = vsel %vm154_vm1, %v281_v61, 0 }
 0x1a6   : > { %295 = vmatpush.bf16.msrb.mxu3 %v286_v63 }
 0x207   : > { %v211_v9 = vpop.xlane.xlu0 %210 }
 0x20b   : > { %v167_v55 = vpop.f32.mrf.mxu1 }
 0x211   : > { %v345_v10 = vpop.xlane.xlu2 %344 }
 0x213   : > { %v169_v56 = vpop.f32.mrf.mxu1 }
 0x218   : > { %v230_v60 = vpop.f32.mrf.mxu3 }
 0x21b   : > { %v266_v57 = vpop.f32.mrf.mxu1 }
 0x21c   : > { %v270_v58 = vsel %vm119_vm0, %v266_v57, -inf }
 0x21d   : > { %271 = vmax.xlane.f32.xlu1 %v270_v58 }
 0x220   : > { %v232_v62 = vpop.f32.mrf.mxu3 }
 0x222   : > { %v364_v0 = vpop.f32.mrf.mxu2 }
 0x223   : > { %v268_v59 = vpop.f32.mrf.mxu1 }
 0x22a   : > { %v366_v1 = vpop.f32.mrf.mxu2 }
 0x290   : > { %v272_v2 = vpop.xlane.xlu1 %271 }
 0x291   : > { %v273_v3 = vsub.f32 %v266_v57, %v272_v2 }
 0x293   : > { %v274_v4 = vmul.f32 1.442695, %v273_v3 }
 0x295   : > { %475 = vpow2.f32 %v274_v4 }
 0x296   : > { %477 = vrcp.f32 %v211_v9 }
 0x297   : > { %479 = vrcp.f32 %v345_v10 }
 0x29b   : > { %v476_v5 = vpop.eup %475 }
 0x29c   : > { %v276_v6 = vsel %vm119_vm0, %v476_v5, 0.0  ;;  %v279_v7 = vpack.c.bf16 %v476_v5, %v476_v5  ;;  %v478_v11 = vpop.eup %477 }
 0x29d   : > { %277 = vadd.xlane.f32.xlu1 %v276_v6  ;;  %v235_v12 = vmul.f32 %v478_v11, %v230_v60  ;;  %v480_v14 = vpop.eup %479 }
 0x29e   : > { %442 = vmatmul.msk.bf16.vlgmr.msrb.gmra.mxu3 %vm119_vm0, %v279_v7  ;;  %v369_v15 = vmul.f32 %v480_v14, %v364_v0 }
 0x29f   : > { %v236_v13 = vpack.c.bf16 %v235_v12, %v235_v12 }
 0x2a0   : > { %v370_v16 = vpack.c.bf16 %v369_v15, %v369_v15 }
 0x2a5   : > { %146 = vadd.xlane.f32.xlu1 %v145_v8 }
 0x2be   : > { %238 = vrot.lane.b32.xlu1 %v236_v13, %s504_s23 }
 0x2c6   : > { %372 = vrot.lane.b32.xlu1 %v370_v16, %s505_s24 }
 0x310   : > { %v278_v17 = vpop.xlane.xlu1 %277 }
 0x318   : > { %v147_v18 = vpop.xlane.xlu1 %146 }
 0x319   : > { %481 = vrcp.f32 %v147_v18 }
 0x31a   : > { %483 = vrcp.f32 %v278_v17 }
 0x31f   : > { %v482_v19 = vpop.eup %481 }
 0x320   : > { %v172_v20 = vmul.f32 %v482_v19, %v167_v55  ;;  %v484_v21 = vpop.eup %483 }
 0x321   : > { %v297_v22 = vpop.f32.mrf.mxu3 }
 0x322   : > { %v173_v23 = vpack.c.bf16 %v172_v20, %v172_v20  ;;  %v302_v24 = vmul.f32 %v484_v21, %v297_v22 }
 0x324   : > { %v303_v25 = vpack.c.bf16 %v302_v24, %v302_v24  ;;  %175 = vst.msk [vmem:[%s111_s27] sm:$0xf] %vm174_vm2, %v173_v23 }
 0x326   : > { %305 = vrot.lane.b32.xlu0 %v303_v25, %s506_s28 }
 0x329   : > { %v299_v26 = vpop.f32.mrf.mxu3 }
 0x330   : > { %v239_v27 = vpop.permute.xlu1 %238 }
 0x331   : > { %242 = vst.msk [vmem:[%s111_s27] sm:$0xf] %vm241_vm3, %v239_v27 }
 0x338   : > { %v373_v29 = vpop.permute.xlu1 %372 }
 0x398   : > { %v306_v28 = vpop.permute.xlu0 %305 }
 0x399   : > { %309 = vst.msk [vmem:[%s111_s27] sm:$0xf] %vm308_vm4, %v306_v28 }
 0x39a   : > { %376 = vst.msk [vmem:[%s111_s27] sm:$0xf] %vm375_vm5, %v373_v29 }
 0x39b PF: > { %s11_s6 = sadd.s32 1, %s491_s6  }
 0x39c   : > { %p8_p4 = scmp.ge.s32.totalorder %s11_s6, 4  }
 0x39e   :  { %10 = sbr.rel (!%p8_p4) target bundleno = 1 (0x1), region = 54 }

// kernel: model_forward.45
= control target key start
LH: loop header
LB: loop body
LE: loop exit
PB: predicated region body
PF: predicated region fallthrough
CT: control target
= control target key end

     0   :  { %vm29_vm0 = vcmask 261120   ;;  %v216_v5 = vmov 32.0   ;;  %vm95_vm6 = vcmask 257024   ;;  %vm168_vm9 = vcmask 523264   ;;  %s301_s0 = inlined_call_operand.vmem [shape: bf16[16,32], index: 0, kind: input, shape index: {}]   ;;  %s302_s2 = inlined_call_operand.vmem [shape: f32[1,32], index: 2, kind: input, shape index: {}]   ;;  %s303_s3 = inlined_call_operand.vmem [shape: f32[1,32], index: 3, kind: input, shape index: {}]   ;;  %s304_s1 = inlined_call_operand.vmem [shape: bf16[32,192], index: 1, kind: input, shape index: {}]   ;;  %s305_s4 = inlined_call_operand.vmem [shape: f32[1,192], index: 4, kind: input, shape index: {}]   ;;  %s306_s5 = inlined_call_operand.vmem [shape: f32[16,192], index: 5, kind: output, shape index: {}]  }
   0x1   :  { %v204_v0 = vld [vmem:[%s301_s0] sm:$0xff]   ;;  %210 = vrcp.f32 %v216_v5  ;;  %v190_v25 = vld [vmem:[%s304_s1 + $0x10] sm:$0xf]  ;;  %v202_v26 = vld [vmem:[%s304_s1 + $0x14] sm:$0xf0] }
   0x2   :  { %v205_v1 = vunpack.c.l.bf16 %v204_v0  ;;  %v206_v3 = vunpack.c.h.bf16 %v204_v0  ;;  %v201_v27 = vld [vmem:[%s304_s1 + $0x14] sm:$0xf]  ;;  %v191_v28 = vor.u32 %v202_v26, %v190_v25  ;;  %v192_v29 = vld [vmem:[%s304_s1 + $0x18] sm:$0xf0]  ;;  %v182_v30 = vld [vmem:[%s304_s1] sm:$0xf] }
   0x3   :  { %v200_v31 = vld [vmem:[%s304_s1 + $0x4] sm:$0xf0]  ;;  %v195_v33 = vor.u32 %v201_v27, %v192_v29  ;;  %v199_v34 = vld [vmem:[%s304_s1 + $0x4] sm:$0xf]  ;;  %v184_v35 = vld [vmem:[%s304_s1 + $0x8] sm:$0xf0] }
   0x4   :  { %v30_v2 = vsel %vm29_vm0, %v205_v1, 0.0  ;;  %v33_v4 = vsel %vm29_vm0, %v206_v3, 0.0  ;;  %145 = vmatpush.bf16.msra.mxu0 %v191_v28  ;;  %v183_v37 = vor.u32 %v200_v31, %v182_v30  ;;  %v187_v38 = vor.u32 %v199_v34, %v184_v35  ;;  %v208_v48 = vld [vmem:[%s302_s2] ss:$0 sm:$0xff] }
   0x5   :  { %31 = vadd.xlane.f32.xlu0 %v30_v2  ;;  %159 = vmatpush.bf16.msra.mxu1 %v195_v33  ;;  %v209_v51 = vld [vmem:[%s303_s3] ss:$0 sm:$0xff] }
   0x7   :  { %v211_v6 = vpop.eup %210 }
   0x8   :  { %v37_v7 = vmul.f32 32.0, %v211_v6  ;;  %vm41_vm1 = vweird.f32 %v211_v6  ;;  %146 = vmatpush.bf16.msra.mxu0 %v183_v37 }
   0x9   :  { %160 = vmatpush.bf16.msra.mxu1 %v187_v38 }
   0xa   :  { %v38_v8 = vsub.f32 1.0, %v37_v7 }
   0xc   :  { %v39_v9 = vmul.f32 %v211_v6, %v38_v8 }
   0xd   :  { %34 = vadd.xlane.f32.xlu0 %v33_v4 }
   0xe   :  { %v40_v10 = vadd.f32 %v211_v6, %v39_v9 }
  0x10   :  { %v42_v11 = vsel %vm41_vm1, %v211_v6, %v40_v10 }
  0x78   :  { %v32_v12 = vpop.xlane.xlu0 %31 }
  0x79   :  { %v43_v13 = vmul.f32 %v42_v11, %v32_v12 }
  0x7b   :  { %v45_v14 = vsub.f32 %v205_v1, %v43_v13  ;;  %v104_v1 = vld [vmem:[%s305_s4] sm:$0x3] }
  0x7c   :  { %v106_v2 = vperm.slane %v104_v1, 0 }
  0x7d   :  { %v47_v15 = vmul.f32 %v45_v14, %v45_v14 }
  0x7f   :  { %v49_v16 = vsel %vm29_vm0, %v47_v15, 0.0 }
  0x80   :  { %50 = vadd.xlane.f32.xlu1 %v49_v16  ;;  %v35_v17 = vpop.xlane.xlu0 %34 }
  0x81   :  { %v44_v18 = vmul.f32 %v42_v11, %v35_v17 }
  0x83   :  { %v46_v19 = vsub.f32 %v206_v3, %v44_v18  ;;  %v107_v3 = vperm.slane %v104_v1, 1 }
  0x85   :  { %v48_v20 = vmul.f32 %v46_v19, %v46_v19 }
  0x87   :  { %v52_v21 = vsel %vm29_vm0, %v48_v20, 0.0 }
  0x88   :  { %53 = vadd.xlane.f32.xlu1 %v52_v21 }
  0xf3   :  { %v51_v22 = vpop.xlane.xlu1 %50 }
  0xf4   :  { %v55_v23 = vmul.f32 %v51_v22, %v42_v11 }
  0xf6   :  { %v57_v24 = vadd.f32 1e-05, %v55_v23 }
  0xf8   :  { %212 = vrsqrt.f32 %v57_v24  ;;  %vm65_vm3 = vweird.f32 %v57_v24 }
  0xfb   :  { %v54_v32 = vpop.xlane.xlu1 %53 }
  0xfc   :  { %v56_v36 = vmul.f32 %v54_v32, %v42_v11 }
  0xfe   :  { %v213_v39 = vpop.eup %212  ;;  %v58_v40 = vadd.f32 1e-05, %v56_v36 }
  0xff   :  { %v60_v41 = vmul.f32 %v213_v39, %v57_v24  ;;  %vm66_vm2 = vweird.f32 %v213_v39 }
 0x100   :  { %214 = vrsqrt.f32 %v58_v40  ;;  %vm67_vm4 = vmor %vm65_vm3, %vm66_vm2  ;;  %vm75_vm7 = vweird.f32 %v58_v40 }
 0x101   :  { %v61_v42 = vmul.f32 %v213_v39, %v60_v41 }
 0x103   :  { %v62_v43 = vmul.f32 0.5, %v61_v42 }
 0x105   :  { %v63_v44 = vsub.f32 1.5, %v62_v43 }
 0x106   :  { %v215_v45 = vpop.eup %214 }
 0x107   :  { %v64_v46 = vmul.f32 %v213_v39, %v63_v44  ;;  %v70_v47 = vmul.f32 %v215_v45, %v58_v40  ;;  %vm76_vm5 = vweird.f32 %v215_v45 }
 0x108   :  { %vm77_vm8 = vmor %vm75_vm7, %vm76_vm5 }
 0x109   :  { %v68_v49 = vsel %vm67_vm4, %v213_v39, %v64_v46  ;;  %v71_v50 = vmul.f32 %v215_v45, %v70_v47 }
 0x10a   :  { %v79_v52 = vmul.f32 %v68_v49, %v45_v14 }
 0x10b   :  { %v72_v53 = vmul.f32 0.5, %v71_v50 }
 0x10c   :  { %v85_v54 = vmul.f32 %v208_v48, %v79_v52 }
 0x10d   :  { %v73_v55 = vsub.f32 1.5, %v72_v53 }
 0x10e   :  { %v91_v56 = vadd.f32 %v209_v51, %v85_v54 }
 0x10f   :  { %v74_v57 = vmul.f32 %v215_v45, %v73_v55 }
 0x110   :  { %v93_v58 = vpack.c.bf16 %v91_v56, %v91_v56 }
 0x111   :  { %v78_v59 = vsel %vm77_vm8, %v215_v45, %v74_v57 }
 0x112   :  { %96 = vst.msk [vmem:[#allocation2] sm:$0xf] %vm95_vm6, %v93_v58  ;;  %v80_v60 = vmul.f32 %v78_v59, %v46_v19 }
 0x114   :  { %v86_v61 = vmul.f32 %v208_v48, %v80_v60 }
 0x116   :  { %v92_v62 = vadd.f32 %v209_v51, %v86_v61 }
 0x118   :  { %v94_v63 = vpack.c.bf16 %v92_v62, %v92_v62 }
 0x11a   :  { %97 = vst.msk [vmem:[#allocation2 + $0x4] sm:$0xf] %vm95_vm6, %v94_v63 }
 0x121   :  { %v198_v0 = vld [vmem:[#allocation2] sm:$0xff] }
 0x122   :  { %196 = vmatmul.msk.bf16.vlgmr.msra.gmra.mxu0 %vm29_vm0, %v198_v0  ;;  %197 = vmatmul.msk.bf16.vlgmr.msra.gmra.mxu1 %vm29_vm0, %v198_v0 }
 0x19f   :  { %v148_v4 = vpop.f32.mrf.mxu0  ;;  %v162_v5 = vpop.f32.mrf.mxu1 }
 0x1a0   :  { %v149_v6 = vadd.f32 %v148_v4, %v106_v2  ;;  %v163_v7 = vadd.f32 %v162_v5, %v107_v3 }
 0x1a2   :  { %167 = vst [vmem:[%s306_s5] sm:$0xff] %v149_v6 }
 0x1a3   :  { %169 = vst.msk [vmem:[%s306_s5 + $0x8] sm:$0xff] %vm168_vm9, %v163_v7 }
 0x1a7   :  { %v150_v8 = vpop.f32.mrf.mxu0  ;;  %v164_v9 = vpop.f32.mrf.mxu1 }
 0x1a8   :  { %v151_v10 = vadd.f32 %v150_v8, %v106_v2  ;;  %v165_v11 = vadd.f32 %v164_v9, %v107_v3 }
 0x1aa   :  { %170 = vst [vmem:[%s306_s5 + $0x10] sm:$0xff] %v151_v10 }
 0x1ab   :  { %171 = vst.msk [vmem:[%s306_s5 + $0x18] sm:$0xff] %vm168_vm9, %v165_v11 }

</bundles_post_ra>
